<compile_context>
chip_gen: v7x
topology: tpu7x:2x2x1
jax: 0.10.0
libtpu: 0.0.40
codegen_flags: <defaults>
</compile_context>

<pallas_src>
import math

import jax
import jax.numpy as jnp
import numpy as np
from jax.experimental import pallas as pl
from jax.experimental.pallas import tpu as pltpu


# ----------------------------------------------------------------------------
# Kernel 1: fused multi-level 1x1 conv (channel matmul) + GroupNorm.
# One (level, batch-element) pair per grid step, channel-major layout so the
# (D, HW) stores are lane-dense.
# ----------------------------------------------------------------------------
def _input_proj_gn_kernel(x_ref, wt_ref, b_ref, gamma_ref, beta_ref,
                          mask_ref, invn_ref, p_ref, o_ref):
    # x:            (Cin_pad, HWmax) bf16, zero-padded channels / lanes
    # wt:           (D, Cin_pad)     bf16  this level's conv weight (padded)
    # b/gamma/beta: (D, 1)           f32   this level's conv bias / GN affine
    # mask:         (1, HWmax)       f32   1.0 on valid lanes, 0.0 on padding
    # invn:         (1, 1)           f32   1 / (HW_level * channels_per_group)
    # p:            (D, D)           bf16  exact 0/1 group-membership matrix
    y = jnp.dot(wt_ref[...], x_ref[...],
                preferred_element_type=jnp.float32) + b_ref[...]        # (D, HW)

    # Masked GroupNorm(G, D) statistics.  Sums / normalization in f32; only the
    # operands of the tiny group-reduce matmul are bf16 (projector is exact
    # 0/1, the stats are pre-scaled by 1/n on the VPU in f32 first).
    m = mask_ref[...]
    ym = y * m
    s1 = jnp.sum(ym, axis=1, keepdims=True)                # (D, 1) sum
    s2 = jnp.sum(ym * y, axis=1, keepdims=True)            # (D, 1) sum of sq
    s = (jnp.concatenate([s1, s2], axis=1) * invn_ref[...]).astype(jnp.bfloat16)
    stats = jnp.dot(p_ref[...], s,
                    preferred_element_type=jnp.float32)                 # (D, 2)
    mean_c = stats[:, 0:1]
    var_c = jnp.maximum(stats[:, 1:2] - mean_c * mean_c, 0.0)   # clamp >= 0
    scale = jax.lax.rsqrt(var_c + 1e-5) * gamma_ref[...]
    o_ref[...] = ((y - mean_c) * scale + beta_ref[...]).astype(o_ref.dtype)


def input_proj_groupnorm(x_all, wt_all, b_all, gamma_all, beta_all,
                         mask_all, invn_all, proj):
    """All feature levels in one pallas_call.

    x_all (L,B,Cin_pad,HWmax) bf16 | wt_all (L,D,Cin_pad) bf16
    b/gamma/beta (L,D,1) f32 | mask (L,1,HWmax) f32 | invn (L,1,1) f32
    proj (D,D) bf16 (exact 0/1).  Returns (L,B,D,HWmax) bf16.
    """
    L, B, Cin, HW = x_all.shape
    D = wt_all.shape[1]
    return pl.pallas_call(
        _input_proj_gn_kernel,
        out_shape=jax.ShapeDtypeStruct((L, B, D, HW), jnp.bfloat16),
        grid=(L, B),
        in_specs=[
            pl.BlockSpec((None, None, Cin, HW), lambda l, b: (l, b, 0, 0)),
            pl.BlockSpec((None, D, Cin), lambda l, b: (l, 0, 0)),
            pl.BlockSpec((None, D, 1), lambda l, b: (l, 0, 0)),
            pl.BlockSpec((None, D, 1), lambda l, b: (l, 0, 0)),
            pl.BlockSpec((None, D, 1), lambda l, b: (l, 0, 0)),
            pl.BlockSpec((None, 1, HW), lambda l, b: (l, 0, 0)),
            pl.BlockSpec((None, 1, 1), lambda l, b: (l, 0, 0)),
            pl.BlockSpec((D, D), lambda l, b: (0, 0)),
        ],
        out_specs=pl.BlockSpec((None, None, D, HW), lambda l, b: (l, b, 0, 0)),
        compiler_params=pltpu.CompilerParams(
            dimension_semantics=("parallel", "parallel")),
    )(x_all, wt_all, b_all, gamma_all, beta_all, mask_all, invn_all, proj)


# ----------------------------------------------------------------------------
# Kernel 2: prediction heads over a block of (decoder-level x batch x query)
# rows.  [bbox-MLP layer1 | class head] fused into one matmul on the shared
# LHS, then MLP layers 2/3, inverse_sigmoid(reference) add, sigmoid.  Output
# is a single lane-dense 128-wide slab (cls | box | zero pad).
# ----------------------------------------------------------------------------
def _heads_kernel(hs_ref, ref_ref, wcat_ref, bcat_ref, w2_ref, b2_ref,
                  w3_ref, b3_ref, o_ref):
    D = w2_ref.shape[0]
    C = wcat_ref.shape[1] - D
    h = hs_ref[...].astype(jnp.bfloat16)                                # (N, D)

    # fused [w1 | wc] matmul: one MXU push instead of two on the same LHS
    y = jnp.dot(h, wcat_ref[...],
                preferred_element_type=jnp.float32) + bcat_ref[...]     # (N, D+C)
    x = jnp.maximum(y[:, :D], 0.0)                                      # MLP l1
    cls = y[:, D:]                                                      # logits

    x = jnp.maximum(
        jnp.dot(x.astype(jnp.bfloat16), w2_ref[...],
                preferred_element_type=jnp.float32) + b2_ref[...], 0.0)
    tmp = jnp.dot(x.astype(jnp.bfloat16), w3_ref[...],
                  preferred_element_type=jnp.float32) + b3_ref[...]     # (N, 4)

    # inverse_sigmoid of the reference (padded to width 4 with 0.5 on the
    # host, which contributes exactly 0 to columns 2:4 -> no lane concat).
    r = jnp.clip(ref_ref[...], 0.0, 1.0)
    inv_sig = jnp.log(jnp.maximum(r, 1e-5) / jnp.maximum(1.0 - r, 1e-5))
    box = jax.nn.sigmoid(tmp + inv_sig)

    # one unmasked lane-dense store: [cls | box | 0-pad] -> (N, 128k)
    pad_w = o_ref.shape[1] - (C + 4)
    o_ref[...] = jnp.concatenate(
        [cls, box, jnp.zeros((cls.shape[0], pad_w), jnp.float32)], axis=1)


def prediction_heads(hs_flat, refs_pad, wcat, bcat, w2, b2, w3, b3, row_blocks):
    """hs_flat: (L*B*Q, D); refs_pad: (L*B*Q, 4) with cols 2:4 == 0.5.

    wcat: (D, D+C) bf16 = [w1 | wc];  bcat: (1, D+C) f32 = [b1 | bc].
    Returns a (L*B*Q, 128*ceil((C+4)/128)) f32 slab: cls in lanes [0:C),
    box in lanes [C:C+4).
    """
    n, d = hs_flat.shape
    c = wcat.shape[1] - d
    out_w = 128 * pl.cdiv(c + 4, 128)
    rb = n // row_blocks
    const = lambda shape: pl.BlockSpec(shape, lambda i: (0,) * len(shape))
    return pl.pallas_call(
        _heads_kernel,
        out_shape=jax.ShapeDtypeStruct((n, out_w), jnp.float32),
        grid=(row_blocks,),
        in_specs=[
            pl.BlockSpec((rb, d), lambda i: (i, 0)),
            pl.BlockSpec((rb, 4), lambda i: (i, 0)),
            const((d, d + c)), const((1, d + c)),
            const((d, d)), const((1, d)),
            const((d, 4)), const((1, 4)),
        ],
        out_specs=pl.BlockSpec((rb, out_w), lambda i: (i, 0)),
        compiler_params=pltpu.CompilerParams(dimension_semantics=("parallel",)),
    )(hs_flat, refs_pad, wcat, bcat, w2, b2, w3, b3)


def _heads_row_blocks(total_rows):
    """2-wide 'parallel' row grid on dual-TensorCore v7x; 1 fused step on
    single-TC v5e/v6e (saves a ~0.35us pipeline step)."""
    try:
        kind = jax.devices()[0].device_kind.lower()
    except Exception:
        kind = ""
    blocks = 2 if "v7" in kind else 1
    while blocks > 1 and (total_rows % blocks or (total_rows // blocks) % 8):
        blocks -= 1
    return max(blocks, 1)


# ----------------------------------------------------------------------------
# Whole forward (jitted): operand packing, both pallas_calls, stubs, slicing.
# ----------------------------------------------------------------------------
def make_forward(levels, hidden_dim, num_groups, num_classes, num_queries,
                 num_dec_layers, heads_row_blocks):
    L = len(levels)
    hws = [h * w for (_, h, w) in levels]
    hw_max = max(hws)
    cin_max = max(c for (c, _, _) in levels)
    cpg = hidden_dim // num_groups
    grp = np.arange(hidden_dim) // cpg
    proj_np = (grp[:, None] == grp[None, :]).astype(np.float32)   # exact 0/1

    def forward(feats, proj_params, head_params, keys):
        B = feats[0].shape[0]
        D = hidden_dim

        # ---- pack per-level conv+GN operands (pad Cin / HW, stack on level) -
        xs, ws, bs, gs, bes, masks, invns = [], [], [], [], [], [], []
        for l, (feat, (w_t, b, gamma, beta)) in enumerate(zip(feats, proj_params)):
            cin, h, w = levels[l]
            hw = h * w
            x = feat.reshape(B, cin, hw)
            xs.append(jnp.pad(x, ((0, 0), (0, cin_max - cin), (0, hw_max - hw))))
            ws.append(jnp.pad(w_t, ((0, 0), (0, cin_max - cin))))
            bs.append(b); gs.append(gamma); bes.append(beta)
            masks.append((jnp.arange(hw_max) < hw).astype(jnp.float32)[None, :])
            invns.append(jnp.full((1, 1), 1.0 / (hw * cpg), jnp.float32))
        x_all = jnp.stack(xs).astype(jnp.bfloat16)       # bf16 at HBM boundary
        wt_all = jnp.stack(ws).astype(jnp.bfloat16)
        b_all, g_all, be_all = jnp.stack(bs), jnp.stack(gs), jnp.stack(bes)
        mask_all, invn_all = jnp.stack(masks), jnp.stack(invns)
        proj = jnp.asarray(proj_np, jnp.bfloat16)

        src_pad = input_proj_groupnorm(x_all, wt_all, b_all, g_all, be_all,
                                       mask_all, invn_all, proj)
        # per-level (B, D, HW_l) bf16, mirrors the module's flattened `srcs`
        src_flat = [src_pad[l, :, :, :hws[l]] for l in range(L)]

        # ---- stubbed deformable transformer ---------------------------------
        # TODO(synk): backbone and deformable transformer (MSDeformAttn enc/dec)
        # are external modules; replaced with deterministic synthetic tensors
        # that depend on srcs.  The extra-level 3x3/stride-2 input_proj path is
        # not exercised (num_feature_levels == num_backbone_outs here).
        mem_mean = jnp.concatenate(src_flat, axis=2).astype(jnp.float32).mean(axis=2)
        hs = jax.random.normal(keys[0],
                               (num_dec_layers, B, num_queries, D), jnp.float32)
        hs = hs + 0.1 * mem_mean[None, :, None, :]         # depend on srcs
        init_reference = jax.nn.sigmoid(
            jax.random.normal(keys[1], (B, num_queries, 2), jnp.float32))
        inter_references = jax.nn.sigmoid(
            jax.random.normal(keys[2], (num_dec_layers, B, num_queries, 2),
                              jnp.float32))
        # reference at level lvl: init_reference if lvl==0 else inter_references[lvl-1]
        refs_all = jnp.concatenate(
            [init_reference[None], inter_references[:num_dec_layers - 1]], axis=0)

        # ---- prediction heads (single pallas_call over L*B*Q rows) ----------
        wc, bc, w1, b1, w2, b2, w3, b3 = head_params
        wcat = jnp.concatenate([w1, wc], axis=1).astype(jnp.bfloat16)   # (D, D+C)
        bcat = jnp.concatenate([b1, bc], axis=1)                        # (1, D+C)
        nt = num_dec_layers * B * num_queries
        hs_flat = hs.reshape(nt, D)
        # pad reference to width 4 with 0.5 (inverse_sigmoid(0.5) == 0)
        refs_pad = jnp.concatenate(
            [refs_all, jnp.full(refs_all.shape[:-1] + (2,), 0.5, jnp.float32)],
            axis=-1).reshape(nt, 4)
        slab = prediction_heads(hs_flat, refs_pad, wcat, bcat,
                                w2.astype(jnp.bfloat16), b2,
                                w3.astype(jnp.bfloat16), b3,
                                heads_row_blocks)
        slab = slab.reshape(num_dec_layers, B, num_queries, -1)
        outputs_class = slab[..., :num_classes]
        outputs_coord = slab[..., num_classes:num_classes + 4]
        return src_flat, outputs_class, outputs_coord, hs, refs_all

    return forward


# ----------------------------------------------------------------------------
# Pure-JAX references (f32) for correctness checks.
# ----------------------------------------------------------------------------
def _ref_input_proj_gn(x_chw, w_t, b, gamma, beta, num_groups):
    y = jnp.einsum("bci,dc->bdi", x_chw, w_t) + b[None]        # (B, D, HW)
    Bb, D, HW = y.shape
    G = num_groups
    yg = y.reshape(Bb, G, D // G, HW)
    mean = yg.mean(axis=(2, 3), keepdims=True)
    var = ((yg - mean) ** 2).mean(axis=(2, 3), keepdims=True)
    yg = (yg - mean) / jnp.sqrt(var + 1e-5)
    return yg.reshape(Bb, D, HW) * gamma[None] + beta[None]


def _ref_heads(hs, refs_all, wc, bc, w1, b1, w2, b2, w3, b3):
    cls = jnp.einsum("lbqd,dc->lbqc", hs, wc) + bc
    x = jax.nn.relu(jnp.einsum("lbqd,de->lbqe", hs, w1) + b1)
    x = jax.nn.relu(jnp.einsum("lbqd,de->lbqe", x, w2) + b2)
    tmp = jnp.einsum("lbqd,de->lbqe", x, w3) + b3
    r = jnp.clip(refs_all, 0.0, 1.0)
    inv = jnp.log(jnp.maximum(r, 1e-5) / jnp.maximum(1.0 - r, 1e-5))
    tmp = tmp.at[..., :2].add(inv)
    return cls, jax.nn.sigmoid(tmp)


# ----------------------------------------------------------------------------
# DeformableDETR-style forward (small synthetic config).
# ----------------------------------------------------------------------------
if __name__ == "__main__":
    key = jax.random.PRNGKey(0)

    # small config
    B = 2
    hidden_dim = 64
    num_groups = 32
    num_classes = 16
    num_queries = 8
    num_dec_layers = 2
    levels = [(8, 16, 16), (16, 16, 8)]      # (Cin, H, W) per feature level

    keys = iter(jax.random.split(key, 64))

    # --- synthetic backbone outputs (NCHW), masks, positional encodings ------
    # TODO(synk): backbone + positional encoding are external; masks/pos are
    # consumed only by the (stubbed) transformer.
    features, pos = [], []
    for (cin, h, w) in levels:
        feat = jax.random.normal(next(keys), (B, cin, h, w), jnp.float32)
        mask = jnp.zeros((B, h, w), jnp.bool_)
        pe = jax.random.normal(next(keys), (B, hidden_dim, h, w), jnp.float32)
        features.append((feat, mask))
        pos.append(pe)

    # --- input_proj parameters (Conv2d k=1 xavier_uniform, bias=0; GN affine) -
    proj_params = []
    for (cin, _, _) in levels:
        bound = math.sqrt(6.0 / (cin + hidden_dim))
        w_t = jax.random.uniform(next(keys), (hidden_dim, cin), jnp.float32,
                                 -bound, bound)                  # (D, Cin)
        proj_params.append((w_t,
                            jnp.zeros((hidden_dim, 1), jnp.float32),
                            jnp.ones((hidden_dim, 1), jnp.float32),
                            jnp.zeros((hidden_dim, 1), jnp.float32)))

    # --- head parameters (shared across levels; with_box_refine=False) -------
    prior_prob = 0.01
    bias_value = -math.log((1 - prior_prob) / prior_prob)
    wc = 0.05 * jax.random.normal(next(keys), (hidden_dim, num_classes), jnp.float32)
    bc = jnp.full((1, num_classes), bias_value, jnp.float32)
    w1 = 0.05 * jax.random.normal(next(keys), (hidden_dim, hidden_dim), jnp.float32)
    b1 = 0.01 * jax.random.normal(next(keys), (1, hidden_dim), jnp.float32)
    w2 = 0.05 * jax.random.normal(next(keys), (hidden_dim, hidden_dim), jnp.float32)
    b2 = 0.01 * jax.random.normal(next(keys), (1, hidden_dim), jnp.float32)
    # module init: last bbox layer weight=0, bias=0, bias[2:]=-2.0
    w3 = jnp.zeros((hidden_dim, 4), jnp.float32)
    b3 = jnp.array([[0.0, 0.0, -2.0, -2.0]], jnp.float32)
    head_params = (wc, bc, w1, b1, w2, b2, w3, b3)

    # query_embed exists in the module (two_stage=False) but is consumed by the
    # (stubbed) transformer.
    query_embed = jax.random.normal(next(keys), (num_queries, 2 * hidden_dim),
                                    jnp.float32)

    transformer_keys = jnp.stack([next(keys), next(keys), next(keys)])

    row_blocks = _heads_row_blocks(num_dec_layers * B * num_queries)
    forward = jax.jit(make_forward(levels, hidden_dim, num_groups, num_classes,
                                   num_queries, num_dec_layers, row_blocks))

    feats = tuple(f for (f, _) in features)
    src_flat, outputs_class, outputs_coord, hs, refs_all = forward(
        feats, tuple(proj_params), head_params, transformer_keys)

    srcs = [sf.reshape(B, hidden_dim, h, w)
            for sf, (_, h, w) in zip(src_flat, levels)]       # NCHW, like module

    out = {
        "pred_logits": outputs_class[-1],
        "pred_boxes": outputs_coord[-1],
        "aux_outputs": [
            {"pred_logits": a, "pred_boxes": bb}
            for a, bb in zip(outputs_class[:-1], outputs_coord[:-1])
        ],
    }

    jax.block_until_ready(out["pred_logits"])
    jax.block_until_ready(out["pred_boxes"])
    for s in srcs:
        jax.block_until_ready(s)

    # --- correctness checks vs pure-f32 references -----------------------------
    # (bf16 activations / weights / output at the conv+GN boundary loosen the
    # tolerance; GN statistics & normalization math are f32 inside the kernel)
    for l, (feat, _) in enumerate(features):
        cin, h, w = levels[l]
        ref_src = _ref_input_proj_gn(feat.reshape(B, cin, h * w),
                                     *proj_params[l], num_groups)
        np.testing.assert_allclose(
            np.asarray(src_flat[l].astype(jnp.float32)), np.asarray(ref_src),
            rtol=5e-2, atol=5e-2)

    ref_cls, ref_box = _ref_heads(hs, refs_all, wc, bc, w1, b1, w2, b2, w3, b3)
    np.testing.assert_allclose(np.asarray(outputs_class), np.asarray(ref_cls),
                               rtol=2e-2, atol=2e-2)
    np.testing.assert_allclose(np.asarray(outputs_coord), np.asarray(ref_box),
                               rtol=2e-2, atol=2e-2)

    print("KERNEL_OK")
</pallas_src>

<mosaic_0001>
module attributes {stable_mosaic.version = 11 : i64} {
  func.func @_input_proj_gn_kernel(%arg0: i32, %arg1: i32, %arg2: memref<1x1x16x256xbf16, #tpu.memory_space<vmem>>, %arg3: memref<1x64x16xbf16, #tpu.memory_space<vmem>>, %arg4: memref<1x64x1xf32, #tpu.memory_space<vmem>>, %arg5: memref<1x64x1xf32, #tpu.memory_space<vmem>>, %arg6: memref<1x64x1xf32, #tpu.memory_space<vmem>>, %arg7: memref<1x1x256xf32, #tpu.memory_space<vmem>>, %arg8: memref<1x1x1xf32, #tpu.memory_space<vmem>>, %arg9: memref<64x64xbf16, #tpu.memory_space<vmem>>, %arg10: memref<1x1x64x256xbf16, #tpu.memory_space<vmem>>) attributes {dimension_semantics = [#tpu.dimension_semantics<parallel>, #tpu.dimension_semantics<parallel>], iteration_bounds = array<i64: 2, 2>, scalar_prefetch = 0 : i64, scratch_operands = 0 : i64, tpu.core_type = #tpu.core_type<tc>, window_params = [{transform_indices = @transform_0, window_bounds = array<i64: 1, 1, 16, 256>}, {transform_indices = @transform_1, window_bounds = array<i64: 1, 64, 16>}, {transform_indices = @transform_2, window_bounds = array<i64: 1, 64, 1>}, {transform_indices = @transform_3, window_bounds = array<i64: 1, 64, 1>}, {transform_indices = @transform_4, window_bounds = array<i64: 1, 64, 1>}, {transform_indices = @transform_5, window_bounds = array<i64: 1, 1, 256>}, {transform_indices = @transform_6, window_bounds = array<i64: 1, 1, 1>}, {pipeline_mode = #tpu.pipeline_mode<synchronous>, transform_indices = @transform_7, window_bounds = array<i64: 64, 64>}, {transform_indices = @transform_8, window_bounds = array<i64: 1, 1, 64, 256>}]} {
    %c0 = arith.constant 0 : index
    %c0_0 = arith.constant 0 : index
    %c0_1 = arith.constant 0 : index
    %0 = vector.load %arg3[%c0, %c0_0, %c0_1] : memref<1x64x16xbf16, #tpu.memory_space<vmem>>, vector<1x64x16xbf16>
    %1 = vector.shape_cast %0 : vector<1x64x16xbf16> to vector<64x16xbf16>
    %c0_2 = arith.constant 0 : index
    %c0_3 = arith.constant 0 : index
    %c0_4 = arith.constant 0 : index
    %c0_5 = arith.constant 0 : index
    %2 = vector.load %arg2[%c0_2, %c0_3, %c0_4, %c0_5] : memref<1x1x16x256xbf16, #tpu.memory_space<vmem>>, vector<1x1x16x256xbf16>
    %3 = vector.shape_cast %2 : vector<1x1x16x256xbf16> to vector<16x256xbf16>
    %cst = arith.constant dense<0.000000e+00> : vector<64x256xf32>
    %4 = tpu.matmul %1, %3, %cst {dimension_numbers = #tpu.dot_dimension_numbers<[1], [0], [0], [1], [0, 0, 1, 1], [], []>} : vector<64x16xbf16>, vector<16x256xbf16>, vector<64x256xf32> -> vector<64x256xf32>
    %c0_6 = arith.constant 0 : index
    %c0_7 = arith.constant 0 : index
    %c0_8 = arith.constant 0 : index
    %5 = vector.load %arg4[%c0_6, %c0_7, %c0_8] : memref<1x64x1xf32, #tpu.memory_space<vmem>>, vector<1x64x1xf32>
    %6 = vector.shape_cast %5 : vector<1x64x1xf32> to vector<64x1xf32>
    %7 = vector.broadcast %6 : vector<64x1xf32> to vector<64x256xf32>
    %8 = arith.addf %4, %7 : vector<64x256xf32>
    %c0_9 = arith.constant 0 : index
    %c0_10 = arith.constant 0 : index
    %c0_11 = arith.constant 0 : index
    %9 = vector.load %arg7[%c0_9, %c0_10, %c0_11] : memref<1x1x256xf32, #tpu.memory_space<vmem>>, vector<1x1x256xf32>
    %10 = vector.shape_cast %9 : vector<1x1x256xf32> to vector<1x256xf32>
    %11 = vector.broadcast %10 : vector<1x256xf32> to vector<64x256xf32>
    %12 = arith.mulf %8, %11 : vector<64x256xf32>
    %cst_12 = arith.constant dense<0.000000e+00> : vector<64xf32>
    %13 = vector.multi_reduction <add>, %12, %cst_12 [1] : vector<64x256xf32> to vector<64xf32>
    %14 = vector.shape_cast %13 : vector<64xf32> to vector<64x1xf32>
    %15 = arith.mulf %12, %8 : vector<64x256xf32>
    %cst_13 = arith.constant dense<0.000000e+00> : vector<64xf32>
    %16 = vector.multi_reduction <add>, %15, %cst_13 [1] : vector<64x256xf32> to vector<64xf32>
    %17 = vector.shape_cast %16 : vector<64xf32> to vector<64x1xf32>
    %18 = tpu.concatenate %14, %17 in 1 : vector<64x1xf32>, vector<64x1xf32> -> vector<64x2xf32>
    %c0_14 = arith.constant 0 : index
    %c0_15 = arith.constant 0 : index
    %c0_16 = arith.constant 0 : index
    %19 = vector.load %arg8[%c0_14, %c0_15, %c0_16] : memref<1x1x1xf32, #tpu.memory_space<vmem>>, vector<1x1x1xf32>
    %20 = vector.shape_cast %19 : vector<1x1x1xf32> to vector<1x1xf32>
    %21 = vector.broadcast %20 : vector<1x1xf32> to vector<64x2xf32>
    %22 = arith.mulf %18, %21 : vector<64x2xf32>
    %23 = arith.truncf %22 : vector<64x2xf32> to vector<64x2xbf16>
    %c0_17 = arith.constant 0 : index
    %c0_18 = arith.constant 0 : index
    %24 = vector.load %arg9[%c0_17, %c0_18] : memref<64x64xbf16, #tpu.memory_space<vmem>>, vector<64x64xbf16>
    %cst_19 = arith.constant dense<0.000000e+00> : vector<64x2xf32>
    %25 = tpu.matmul %24, %23, %cst_19 {dimension_numbers = #tpu.dot_dimension_numbers<[1], [0], [0], [1], [0, 0, 1, 1], [], []>} : vector<64x64xbf16>, vector<64x2xbf16>, vector<64x2xf32> -> vector<64x2xf32>
    %26 = vector.extract_strided_slice %25 {offsets = [0, 0], sizes = [64, 1], strides = [1, 1]} : vector<64x2xf32> to vector<64x1xf32>
    %27 = vector.extract_strided_slice %25 {offsets = [0, 1], sizes = [64, 1], strides = [1, 1]} : vector<64x2xf32> to vector<64x1xf32>
    %28 = arith.mulf %26, %26 : vector<64x1xf32>
    %29 = arith.subf %27, %28 : vector<64x1xf32>
    %cst_20 = arith.constant 0.000000e+00 : f32
    %30 = vector.broadcast %cst_20 : f32 to vector<64x1xf32>
    %31 = arith.maximumf %29, %30 : vector<64x1xf32>
    %cst_21 = arith.constant 9.99999974E-6 : f32
    %32 = vector.broadcast %cst_21 : f32 to vector<64x1xf32>
    %33 = arith.addf %31, %32 : vector<64x1xf32>
    %34 = math.rsqrt %33 : vector<64x1xf32>
    %c0_22 = arith.constant 0 : index
    %c0_23 = arith.constant 0 : index
    %c0_24 = arith.constant 0 : index
    %35 = vector.load %arg5[%c0_22, %c0_23, %c0_24] : memref<1x64x1xf32, #tpu.memory_space<vmem>>, vector<1x64x1xf32>
    %36 = vector.shape_cast %35 : vector<1x64x1xf32> to vector<64x1xf32>
    %37 = arith.mulf %34, %36 : vector<64x1xf32>
    %38 = vector.broadcast %26 : vector<64x1xf32> to vector<64x256xf32>
    %39 = arith.subf %8, %38 : vector<64x256xf32>
    %40 = vector.broadcast %37 : vector<64x1xf32> to vector<64x256xf32>
    %41 = arith.mulf %39, %40 : vector<64x256xf32>
    %c0_25 = arith.constant 0 : index
    %c0_26 = arith.constant 0 : index
    %c0_27 = arith.constant 0 : index
    %42 = vector.load %arg6[%c0_25, %c0_26, %c0_27] : memref<1x64x1xf32, #tpu.memory_space<vmem>>, vector<1x64x1xf32>
    %43 = vector.shape_cast %42 : vector<1x64x1xf32> to vector<64x1xf32>
    %44 = vector.broadcast %43 : vector<64x1xf32> to vector<64x256xf32>
    %45 = arith.addf %41, %44 : vector<64x256xf32>
    %46 = arith.truncf %45 : vector<64x256xf32> to vector<64x256xbf16>
    %c0_28 = arith.constant 0 : index
    %c0_29 = arith.constant 0 : index
    %c0_30 = arith.constant 0 : index
    %c0_31 = arith.constant 0 : index
    %47 = vector.load %arg10[%c0_28, %c0_29, %c0_30, %c0_31] : memref<1x1x64x256xbf16, #tpu.memory_space<vmem>>, vector<1x1x64x256xbf16>
    %48 = vector.shape_cast %47 : vector<1x1x64x256xbf16> to vector<64x256xbf16>
    %49 = vector.shape_cast %46 : vector<64x256xbf16> to vector<1x1x64x256xbf16>
    tpu.vector_store %arg10[%c0_28, %c0_29, %c0_30, %c0_31], %49 {strides = array<i32>} : memref<1x1x64x256xbf16, #tpu.memory_space<vmem>>, vector<1x1x64x256xbf16>,
    return
  }
  func.func @transform_0(%arg0: i32, %arg1: i32) -> (i32, i32, i32, i32) {
    %c0_i32 = arith.constant 0 : i32
    %c0_i32_0 = arith.constant 0 : i32
    %c0_i32_1 = arith.constant 0 : i32
    return %arg0, %arg1, %c0_i32, %c0_i32_0 : i32, i32, i32, i32
  }
  func.func @transform_1(%arg0: i32, %arg1: i32) -> (i32, i32, i32) {
    %c0_i32 = arith.constant 0 : i32
    %c0_i32_0 = arith.constant 0 : i32
    %c0_i32_1 = arith.constant 0 : i32
    return %arg0, %c0_i32, %c0_i32_0 : i32, i32, i32
  }
  func.func @transform_2(%arg0: i32, %arg1: i32) -> (i32, i32, i32) {
    %c0_i32 = arith.constant 0 : i32
    %c0_i32_0 = arith.constant 0 : i32
    %c0_i32_1 = arith.constant 0 : i32
    return %arg0, %c0_i32, %c0_i32_0 : i32, i32, i32
  }
  func.func @transform_3(%arg0: i32, %arg1: i32) -> (i32, i32, i32) {
    %c0_i32 = arith.constant 0 : i32
    %c0_i32_0 = arith.constant 0 : i32
    %c0_i32_1 = arith.constant 0 : i32
    return %arg0, %c0_i32, %c0_i32_0 : i32, i32, i32
  }
  func.func @transform_4(%arg0: i32, %arg1: i32) -> (i32, i32, i32) {
    %c0_i32 = arith.constant 0 : i32
    %c0_i32_0 = arith.constant 0 : i32
    %c0_i32_1 = arith.constant 0 : i32
    return %arg0, %c0_i32, %c0_i32_0 : i32, i32, i32
  }
  func.func @transform_5(%arg0: i32, %arg1: i32) -> (i32, i32, i32) {
    %c0_i32 = arith.constant 0 : i32
    %c0_i32_0 = arith.constant 0 : i32
    %c0_i32_1 = arith.constant 0 : i32
    return %arg0, %c0_i32, %c0_i32_0 : i32, i32, i32
  }
  func.func @transform_6(%arg0: i32, %arg1: i32) -> (i32, i32, i32) {
    %c0_i32 = arith.constant 0 : i32
    %c0_i32_0 = arith.constant 0 : i32
    %c0_i32_1 = arith.constant 0 : i32
    return %arg0, %c0_i32, %c0_i32_0 : i32, i32, i32
  }
  func.func @transform_7(%arg0: i32, %arg1: i32) -> (i32, i32) {
    %c0_i32 = arith.constant 0 : i32
    %c0_i32_0 = arith.constant 0 : i32
    %c0_i32_1 = arith.constant 0 : i32
    return %c0_i32, %c0_i32_0 : i32, i32
  }
  func.func @transform_8(%arg0: i32, %arg1: i32) -> (i32, i32, i32, i32) {
    %c0_i32 = arith.constant 0 : i32
    %c0_i32_0 = arith.constant 0 : i32
    %c0_i32_1 = arith.constant 0 : i32
    return %arg0, %arg1, %c0_i32, %c0_i32_0 : i32, i32, i32, i32
  }
}

module attributes {stable_mosaic.version = 11 : i64} {
  func.func @_heads_kernel(%arg0: i32, %arg1: memref<32x64xf32, #tpu.memory_space<vmem>>, %arg2: memref<32x4xf32, #tpu.memory_space<vmem>>, %arg3: memref<64x80xbf16, #tpu.memory_space<vmem>>, %arg4: memref<1x80xf32, #tpu.memory_space<vmem>>, %arg5: memref<64x64xbf16, #tpu.memory_space<vmem>>, %arg6: memref<1x64xf32, #tpu.memory_space<vmem>>, %arg7: memref<64x4xbf16, #tpu.memory_space<vmem>>, %arg8: memref<1x4xf32, #tpu.memory_space<vmem>>, %arg9: memref<32x128xf32, #tpu.memory_space<vmem>>) attributes {dimension_semantics = [#tpu.dimension_semantics<parallel>], iteration_bounds = array<i64: 1>, scalar_prefetch = 0 : i64, scratch_operands = 0 : i64, tpu.core_type = #tpu.core_type<tc>, window_params = [{transform_indices = @transform_0, window_bounds = array<i64: 32, 64>}, {transform_indices = @transform_1, window_bounds = array<i64: 32, 4>}, {pipeline_mode = #tpu.pipeline_mode<synchronous>, transform_indices = @transform_2, window_bounds = array<i64: 64, 80>}, {pipeline_mode = #tpu.pipeline_mode<synchronous>, transform_indices = @transform_3, window_bounds = array<i64: 1, 80>}, {pipeline_mode = #tpu.pipeline_mode<synchronous>, transform_indices = @transform_4, window_bounds = array<i64: 64, 64>}, {pipeline_mode = #tpu.pipeline_mode<synchronous>, transform_indices = @transform_5, window_bounds = array<i64: 1, 64>}, {pipeline_mode = #tpu.pipeline_mode<synchronous>, transform_indices = @transform_6, window_bounds = array<i64: 64, 4>}, {pipeline_mode = #tpu.pipeline_mode<synchronous>, transform_indices = @transform_7, window_bounds = array<i64: 1, 4>}, {transform_indices = @transform_8, window_bounds = array<i64: 32, 128>}]} {
    %c0 = arith.constant 0 : index
    %c0_0 = arith.constant 0 : index
    %0 = vector.load %arg1[%c0, %c0_0] : memref<32x64xf32, #tpu.memory_space<vmem>>, vector<32x64xf32>
    %1 = arith.truncf %0 : vector<32x64xf32> to vector<32x64xbf16>
    %c0_1 = arith.constant 0 : index
    %c0_2 = arith.constant 0 : index
    %2 = vector.load %arg3[%c0_1, %c0_2] : memref<64x80xbf16, #tpu.memory_space<vmem>>, vector<64x80xbf16>
    %cst = arith.constant dense<0.000000e+00> : vector<32x80xf32>
    %3 = tpu.matmul %1, %2, %cst {dimension_numbers = #tpu.dot_dimension_numbers<[1], [0], [0], [1], [0, 0, 1, 1], [], []>} : vector<32x64xbf16>, vector<64x80xbf16>, vector<32x80xf32> -> vector<32x80xf32>
    %c0_3 = arith.constant 0 : index
    %c0_4 = arith.constant 0 : index
    %4 = vector.load %arg4[%c0_3, %c0_4] : memref<1x80xf32, #tpu.memory_space<vmem>>, vector<1x80xf32>
    %5 = vector.broadcast %4 : vector<1x80xf32> to vector<32x80xf32>
    %6 = arith.addf %3, %5 : vector<32x80xf32>
    %7 = vector.extract_strided_slice %6 {offsets = [0, 0], sizes = [32, 64], strides = [1, 1]} : vector<32x80xf32> to vector<32x64xf32>
    %cst_5 = arith.constant 0.000000e+00 : f32
    %8 = vector.broadcast %cst_5 : f32 to vector<32x64xf32>
    %9 = arith.maximumf %7, %8 : vector<32x64xf32>
    %10 = vector.extract_strided_slice %6 {offsets = [0, 64], sizes = [32, 16], strides = [1, 1]} : vector<32x80xf32> to vector<32x16xf32>
    %11 = arith.truncf %9 : vector<32x64xf32> to vector<32x64xbf16>
    %c0_6 = arith.constant 0 : index
    %c0_7 = arith.constant 0 : index
    %12 = vector.load %arg5[%c0_6, %c0_7] : memref<64x64xbf16, #tpu.memory_space<vmem>>, vector<64x64xbf16>
    %cst_8 = arith.constant dense<0.000000e+00> : vector<32x64xf32>
    %13 = tpu.matmul %11, %12, %cst_8 {dimension_numbers = #tpu.dot_dimension_numbers<[1], [0], [0], [1], [0, 0, 1, 1], [], []>} : vector<32x64xbf16>, vector<64x64xbf16>, vector<32x64xf32> -> vector<32x64xf32>
    %c0_9 = arith.constant 0 : index
    %c0_10 = arith.constant 0 : index
    %14 = vector.load %arg6[%c0_9, %c0_10] : memref<1x64xf32, #tpu.memory_space<vmem>>, vector<1x64xf32>
    %15 = vector.broadcast %14 : vector<1x64xf32> to vector<32x64xf32>
    %16 = arith.addf %13, %15 : vector<32x64xf32>
    %cst_11 = arith.constant 0.000000e+00 : f32
    %17 = vector.broadcast %cst_11 : f32 to vector<32x64xf32>
    %18 = arith.maximumf %16, %17 : vector<32x64xf32>
    %19 = arith.truncf %18 : vector<32x64xf32> to vector<32x64xbf16>
    %c0_12 = arith.constant 0 : index
    %c0_13 = arith.constant 0 : index
    %20 = vector.load %arg7[%c0_12, %c0_13] : memref<64x4xbf16, #tpu.memory_space<vmem>>, vector<64x4xbf16>
    %cst_14 = arith.constant dense<0.000000e+00> : vector<32x4xf32>
    %21 = tpu.matmul %19, %20, %cst_14 {dimension_numbers = #tpu.dot_dimension_numbers<[1], [0], [0], [1], [0, 0, 1, 1], [], []>} : vector<32x64xbf16>, vector<64x4xbf16>, vector<32x4xf32> -> vector<32x4xf32>
    %c0_15 = arith.constant 0 : index
    %c0_16 = arith.constant 0 : index
    %22 = vector.load %arg8[%c0_15, %c0_16] : memref<1x4xf32, #tpu.memory_space<vmem>>, vector<1x4xf32>
    %23 = vector.broadcast %22 : vector<1x4xf32> to vector<32x4xf32>
    %24 = arith.addf %21, %23 : vector<32x4xf32>
    %c0_17 = arith.constant 0 : index
    %c0_18 = arith.constant 0 : index
    %25 = vector.load %arg2[%c0_17, %c0_18] : memref<32x4xf32, #tpu.memory_space<vmem>>, vector<32x4xf32>
    %cst_19 = arith.constant 0.000000e+00 : f32
    %cst_20 = arith.constant 1.000000e+00 : f32
    %26 = vector.broadcast %cst_19 : f32 to vector<32x4xf32>
    %27 = arith.maximumf %26, %25 : vector<32x4xf32>
    %28 = vector.broadcast %cst_20 : f32 to vector<32x4xf32>
    %29 = arith.minimumf %28, %27 : vector<32x4xf32>
    %cst_21 = arith.constant 9.99999974E-6 : f32
    %30 = vector.broadcast %cst_21 : f32 to vector<32x4xf32>
    %31 = arith.maximumf %29, %30 : vector<32x4xf32>
    %cst_22 = arith.constant 1.000000e+00 : f32
    %32 = vector.broadcast %cst_22 : f32 to vector<32x4xf32>
    %33 = arith.subf %32, %29 : vector<32x4xf32>
    %cst_23 = arith.constant 9.99999974E-6 : f32
    %34 = vector.broadcast %cst_23 : f32 to vector<32x4xf32>
    %35 = arith.maximumf %33, %34 : vector<32x4xf32>
    %36 = arith.divf %31, %35 : vector<32x4xf32>
    %37 = math.log %36 : vector<32x4xf32>
    %38 = arith.addf %24, %37 : vector<32x4xf32>
    %39 = arith.negf %38 : vector<32x4xf32>
    %40 = math.exp %39 : vector<32x4xf32>
    %cst_24 = arith.constant 1.000000e+00 : f32
    %41 = vector.broadcast %cst_24 : f32 to vector<32x4xf32>
    %42 = arith.addf %41, %40 : vector<32x4xf32>
    %43 = arith.divf %41, %42 : vector<32x4xf32>
    %cst_25 = arith.constant 0.000000e+00 : f32
    %44 = vector.broadcast %cst_25 : f32 to vector<32x108xf32>
    %45 = tpu.concatenate %10, %43, %44 in 1 : vector<32x16xf32>, vector<32x4xf32>, vector<32x108xf32> -> vector<32x128xf32>
    %c0_26 = arith.constant 0 : index
    %c0_27 = arith.constant 0 : index
    %46 = vector.load %arg9[%c0_26, %c0_27] : memref<32x128xf32, #tpu.memory_space<vmem>>, vector<32x128xf32>
    tpu.vector_store %arg9[%c0_26, %c0_27], %45 {strides = array<i32>} : memref<32x128xf32, #tpu.memory_space<vmem>>, vector<32x128xf32>,
    return
  }
  func.func @transform_0(%arg0: i32) -> (i32, i32) {
    %c0_i32 = arith.constant 0 : i32
    %c0_i32_0 = arith.constant 0 : i32
    return %arg0, %c0_i32 : i32, i32
  }
  func.func @transform_1(%arg0: i32) -> (i32, i32) {
    %c0_i32 = arith.constant 0 : i32
    %c0_i32_0 = arith.constant 0 : i32
    return %arg0, %c0_i32 : i32, i32
  }
  func.func @transform_2(%arg0: i32) -> (i32, i32) {
    %c0_i32 = arith.constant 0 : i32
    %c0_i32_0 = arith.constant 0 : i32
    %c0_i32_1 = arith.constant 0 : i32
    return %c0_i32, %c0_i32_0 : i32, i32
  }
  func.func @transform_3(%arg0: i32) -> (i32, i32) {
    %c0_i32 = arith.constant 0 : i32
    %c0_i32_0 = arith.constant 0 : i32
    %c0_i32_1 = arith.constant 0 : i32
    return %c0_i32, %c0_i32_0 : i32, i32
  }
  func.func @transform_4(%arg0: i32) -> (i32, i32) {
    %c0_i32 = arith.constant 0 : i32
    %c0_i32_0 = arith.constant 0 : i32
    %c0_i32_1 = arith.constant 0 : i32
    return %c0_i32, %c0_i32_0 : i32, i32
  }
  func.func @transform_5(%arg0: i32) -> (i32, i32) {
    %c0_i32 = arith.constant 0 : i32
    %c0_i32_0 = arith.constant 0 : i32
    %c0_i32_1 = arith.constant 0 : i32
    return %c0_i32, %c0_i32_0 : i32, i32
  }
  func.func @transform_6(%arg0: i32) -> (i32, i32) {
    %c0_i32 = arith.constant 0 : i32
    %c0_i32_0 = arith.constant 0 : i32
    %c0_i32_1 = arith.constant 0 : i32
    return %c0_i32, %c0_i32_0 : i32, i32
  }
  func.func @transform_7(%arg0: i32) -> (i32, i32) {
    %c0_i32 = arith.constant 0 : i32
    %c0_i32_0 = arith.constant 0 : i32
    %c0_i32_1 = arith.constant 0 : i32
    return %c0_i32, %c0_i32_0 : i32, i32
  }
  func.func @transform_8(%arg0: i32) -> (i32, i32) {
    %c0_i32 = arith.constant 0 : i32
    %c0_i32_0 = arith.constant 0 : i32
    return %arg0, %c0_i32 : i32, i32
  }
}

</mosaic_0001>

<bundles_post_ra>
// kernel: forward.2
= control target key start
LH: loop header
LB: loop body
LE: loop exit
PB: predicated region body
PF: predicated region fallthrough
CT: control target
= control target key end

     0   :  { %s1622_s27 = smov 0   ;;  %s1624_s28 = smov 0   ;;  %s1948_s0 = inlined_call_operand.vmem [shape: bf16[2,2,16,256], index: 0, kind: input, shape index: {}]   ;;  %s1949_s1 = inlined_call_operand.vmem [shape: bf16[2,64,16], index: 1, kind: input, shape index: {}]   ;;  %s1950_s2 = inlined_call_operand.vmem [shape: f32[2,64,1], index: 2, kind: input, shape index: {}]   ;;  %s1951_s3 = inlined_call_operand.vmem [shape: f32[2,64,1], index: 3, kind: input, shape index: {}]   ;;  %s1952_s4 = inlined_call_operand.vmem [shape: f32[2,64,1], index: 4, kind: input, shape index: {}]   ;;  %s1953_s5 = inlined_call_operand.vmem [shape: f32[2,1,256], index: 5, kind: input, shape index: {}]   ;;  %s1954_s6 = inlined_call_operand.vmem [shape: f32[2,1,1], index: 6, kind: input, shape index: {}]   ;;  %s1955_s7 = inlined_call_operand.vmem [shape: bf16[64,64], index: 7, kind: input, shape index: {}]   ;;  %s1956_s8 = inlined_call_operand.vmem [shape: bf16[2,2,64,256], index: 8, kind: output, shape index: {}]  }
   0x1   :  { %s1626_s29 = smov 0   ;;  %s1628_s30 = smov 0  }
   0x2   :  { %s1630_s9 = smov 0  }
   0x3 LB: > { %s27_s10 = sadd.s32 1, %s1564_s29  ;;  %s30_s11 = sadd.s32 1, %s1568_s30  ;;  %s1572_s9 = sphi %s1630_s9, %s18_s9   ;;  %s1568_s30 = sphi %s1628_s30, %s1960_s30   ;;  %s1564_s29 = sphi %s1626_s29, %s1959_s29   ;;  %s1560_s28 = sphi %s1624_s28, %s1958_s28   ;;  %s1556_s27 = sphi %s1622_s27, %s1957_s27  }
   0x4   : > { %p28_p0 = scmp.ge.s32.totalorder %s27_s10, 2  ;;  %p1377_p1 = scmp.ge.s32.totalorder %s1572_s9, 1 }
   0x5   : > { %p339_p2 = scmp.lt.s32.totalorder %s1572_s9, 5 }
   0x6   : > { %s1962_s10 = smov (%p28_p0, %s27_s10), 0  ;;  %s1964_s11 = smov (!%p28_p0, %s30_s11), %s1568_s30 }
   0x7   : > { %p340_p3 = pnand %p1377_p1, %p339_p2  ;;  %p32_p4 = scmp.ge.s32.totalorder %s1964_s11, 2 }
   0x8   : > { %p408_p5 = scmp.lt.s32.totalorder (!%p340_p3), %s1560_s28, 1  ;;  %p410_p6 = scmp.lt.s32.totalorder (!%p340_p3), %s1556_s27, 1  ;;  %v1574_v0 = vmov (!%p340_p3), 0   ;;  %vm542_vm0 = vcmask (!%p340_p3), 130048   ;;  %v630_v15 = vlaneseq (!%p340_p3)  ;;  %vm779_vm1 = vcmask (!%p340_p3), 523264  }
   0x9   : > { %s1966_s11 = smov (%p32_p4, %s1964_s11), 0  ;;  %343 = sbr.rel (%p340_p3) target bundleno = 950 (0x3b6), region = 52 }
   0xa   : > { %587 = vmatprep.mubr.bf16.mxu0 (!%p340_p3), %v1574_v0  ;;  %1501 = vset.pattern.permute.xlu0 (!%p340_p3), %v1574_v0  ;;  %v631_v16 = vshrl.u32 (!%p340_p3), %v630_v15, 7  ;;  %vm720_vm2 = vcmask (!%p340_p3), 7168  }
   0xb   : > { %1502 = vset.pattern.permute.xlu1 (!%p340_p3), %v1574_v0 }
   0xc   : > { %v632_v17 = vsub.s32 (!%p340_p3), 0, %v631_v16  ;;  %v636_v19 = vsub.s32 (!%p340_p3), 1, %v631_v16 }
  0x10   : > { %s1968_s28 = smov (!%p408_p5, %s1560_s28), 1  ;;  %s1970_s27 = smov (!%p410_p6, %s1556_s27), 1 }
  0x11   : > { %s1379_s12 = sshll.u32 %s1968_s28, 3  ;;  %s1422_s13 = sshll.u32 %s1968_s28, 5 }
  0x12   : > { %s1378_s14 = sshll.u32 %s1970_s27, 2  ;;  %s1662_s17 = scalar_lea.vmem %s1949_s1, %s1422_s13 }
  0x13   : > { %s414_s18 = sadd.s32 %s1379_s12, %s1378_s14  ;;  %s1390_s23 = sshll.u32 %s1970_s27, 4  ;;  %v1510_v3 = vld [vmem:[%s1662_s17] sm:$0xff]   ;;  %v1511_v10 = vld [vmem:[%s1662_s17 + $0x8] sm:$0xff]   ;;  %v1512_v13 = vld [vmem:[%s1662_s17 + $0x10] sm:$0xff]  }
  0x14   : > { %s1380_s19 = sshll.u32 %s414_s18, 2  ;;  %s1667_s24 = sadd.s32 %s1422_s13, %s1390_s23  ;;  %v1513_v14 = vld [vmem:[%s1662_s17 + $0x18] sm:$0xff]  }
  0x15   : > { %s416_s22 = scalar_lea.vmem %s1948_s0, %s1380_s19  ;;  %s1670_s25 = sshll.u32 %s1968_s28, 6 }
  0x16   : > { %v1507_v1 = vld [vmem:[%s416_s22 + $0x4] ss:$8 sps:$4 sm:$0xff]   ;;  %v1509_v2 = vld [vmem:[%s416_s22] ss:$8 sps:$4 sm:$0xff]   ;;  %s426_s16 = scalar_lea.vmem %s1950_s2, %s1670_s25  ;;  %s1389_s27 = sshll.u32 %s1968_s28, 1 }
  0x17   : > { %555 = vmatprep.subr.bf16.mxu0 %v1507_v1  ;;  %v464_v4 = vld [vmem:[%s426_s16] sm:$0xff]  ;;  %v466_v5 = vld [vmem:[%s426_s16 + $0x10] sm:$0xff]  ;;  %v465_v6 = vld [vmem:[%s426_s16 + $0x8] sm:$0xff]  ;;  %s440_s14 = scalar_lea.vmem %s1953_s5, %s1389_s27  ;;  %s443_s19 = scalar_lea.vmem %s1954_s6, %s1968_s28 }
  0x18   : > { %556 = vmatpush1.bf16.msra.mxu0 %v1509_v2  ;;  %474 = vperm.xlu0 %1501, %v464_v4   ;;  %v467_v7 = vld [vmem:[%s426_s16 + $0x18] sm:$0xff]  ;;  %v468_v8 = vld [vmem:[%s426_s16 + $0x20] sm:$0xff]  ;;  %v469_v9 = vld [vmem:[%s426_s16 + $0x28] sm:$0xff]  ;;  %s1575_s27 = smov 1  }
  0x19   : > { %484 = vperm.xlu1 %1502, %v466_v5   ;;  %v470_v11 = vld [vmem:[%s426_s16 + $0x30] sm:$0xff]  ;;  %v471_v12 = vld [vmem:[%s426_s16 + $0x38] sm:$0xff]  ;;  %v628_v18 = vld [vmem:[%s440_s14] sm:$0x3]  ;;  %s431_s14 = scalar_lea.vmem %s1951_s3, %s1670_s25 }
  0x1a   : > { %v1691_v21 = vrot.slane %v628_v18, %v632_v17  ;;  %v1693_v22 = vrot.slane %v628_v18, %v636_v19 }
  0x1b   : > { %1399 = vmatmul.mubr.msk.bf16.vlgmr.msra.gmra.mrb[0].mxu0 %vm542_vm0, %v1510_v3 }
  0x1c   : > { %597 = vmatprep.mubr.bf16.mxu0 %v1574_v0  ;;  %479 = vperm.xlu0 %1501, %v465_v6  }
  0x1d   : > { %489 = vperm.xlu1 %1502, %v467_v7  }
  0x20   : > { %494 = vperm.xlu0 %1501, %v468_v8  }
  0x21   : > { %499 = vperm.xlu1 %1502, %v469_v9  }
  0x23   : > { %1400 = vmatmul.mubr.msk.bf16.gmra.mrb[4].mxu0 %vm542_vm0, %v1511_v10 }
  0x24   : > { %607 = vmatprep.mubr.bf16.mxu0 %v1574_v0  ;;  %504 = vperm.xlu0 %1501, %v470_v11  }
  0x25   : > { %509 = vperm.xlu1 %1502, %v471_v12  }
  0x2b   : > { %1401 = vmatmul.mubr.msk.bf16.gmra.mrb[8].mxu0 %vm542_vm0, %v1512_v13 }
  0x2c   : > { %617 = vmatprep.mubr.bf16.mxu0 %v1574_v0 }
  0x33   : > { %1402 = vmatmul.mubr.msk.bf16.gmra.mrb[12].mxu0 %vm542_vm0, %v1513_v14 }
  0x97   : > { %v475_v20 = vpop.permute.xlu0 %474 }
  0x98   : > { %v485_v32 = vpop.permute.xlu1 %484 }
  0x9b   : > { %v480_v26 = vpop.permute.xlu0 %479 }
  0x9c   : > { %v490_v46 = vpop.permute.xlu1 %489 }
  0x9f   : > { %v495_v61 = vpop.permute.xlu0 %494 }
  0xa0   : > { %v500_v4 = vpop.permute.xlu1 %499 }
  0xee   : > { %v589_v23 = vpop.f32.mrb[0].mxu0 }
  0xef   : > { %v1695_v24 = vadd.f32 %v589_v23, %v475_v20  ;;  %v591_v25 = vpop.f32.mrb[1].mxu0  ;;  %v505_v23 = vpop.permute.xlu0 %504 }
  0xf0   : > { %v1697_v27 = vadd.f32 %v591_v25, %v475_v20  ;;  %v593_v28 = vpop.f32.mrb[2].mxu0 }
  0xf1   : > { %v1699_v29 = vadd.f32 %v593_v28, %v480_v26  ;;  %v595_v30 = vpop.f32.mrb[3].mxu0  ;;  %v640_v31 = vmul.f32 %v1691_v21, %v1695_v24 }
  0xf2   : > { %v1703_v33 = vadd.f32 %v595_v30, %v480_v26  ;;  %v641_v34 = vmul.f32 %v1693_v22, %v1697_v27 }
  0xf3   : > { %v642_v35 = vmul.f32 %v1691_v21, %v1699_v29  ;;  %v680_v38 = vmul.f32 %v640_v31, %v1695_v24 }
  0xf4   : > { %v656_v36 = vadd.f32 %v641_v34, %v640_v31  ;;  %v643_v37 = vmul.f32 %v1693_v22, %v1703_v33  ;;  %v681_v39 = vmul.f32 %v641_v34, %v1697_v27 }
  0xf5   : > { %v682_v44 = vmul.f32 %v642_v35, %v1699_v29 }
  0xf6   : > { %v599_v40 = vpop.f32.mrb[4].mxu0  ;;  %657 = vadd.xlane.f32.xlu0 %v656_v36  ;;  %v659_v41 = vadd.f32 %v643_v37, %v642_v35  ;;  %v683_v45 = vmul.f32 %v643_v37, %v1703_v33  ;;  %v696_v49 = vadd.f32 %v681_v39, %v680_v38  ;;  %v510_v37 = vpop.permute.xlu1 %509 }
  0xf7   : > { %v1713_v42 = vadd.f32 %v599_v40, %v485_v32  ;;  %v601_v43 = vpop.f32.mrb[5].mxu0 }
  0xf8   : > { %v1717_v47 = vadd.f32 %v601_v43, %v485_v32  ;;  %v603_v48 = vpop.f32.mrb[6].mxu0  ;;  %660 = vadd.xlane.f32.xlu1 %v659_v41  ;;  %v699_v55 = vadd.f32 %v683_v45, %v682_v44 }
  0xf9   : > { %v1719_v50 = vadd.f32 %v603_v48, %v490_v46  ;;  %v605_v51 = vpop.f32.mrb[7].mxu0  ;;  %v644_v52 = vmul.f32 %v1691_v21, %v1713_v42 }
  0xfa   : > { %v1723_v53 = vadd.f32 %v605_v51, %v490_v46  ;;  %697 = vadd.xlane.f32.xlu0 %v696_v49  ;;  %v645_v54 = vmul.f32 %v1693_v22, %v1717_v47 }
  0xfb   : > { %v646_v56 = vmul.f32 %v1691_v21, %v1719_v50  ;;  %v684_v58 = vmul.f32 %v644_v52, %v1713_v42 }
  0xfc   : > { %v662_v57 = vadd.f32 %v645_v54, %v644_v52  ;;  %v685_v59 = vmul.f32 %v645_v54, %v1717_v47  ;;  %v647_v60 = vmul.f32 %v1693_v22, %v1723_v53  ;;  %v1403_v54 = vld [vmem:[%s443_s19] ss:$0 sm:$0xff]  ;;  %s1863_s19 = scalar_lea.vmem %s1952_s4, %s1670_s25  ;;  %s1392_s25 = sshll.u32 %s1667_s24, 2 }
  0xfd   : > { %v686_v2 = vmul.f32 %v646_v56, %v1719_v50  ;;  %s1901_s28 = scalar_lea.vmem %s1956_s8, %s1392_s25 }
  0xfe   : > { %v609_v62 = vpop.f32.mrb[8].mxu0  ;;  %663 = vadd.xlane.f32.xlu1 %v662_v57  ;;  %700 = vadd.xlane.f32.xlu0 %v699_v55  ;;  %v687_v3 = vmul.f32 %v647_v60, %v1723_v53  ;;  %v702_v7 = vadd.f32 %v685_v59, %v684_v58  ;;  %v665_v8 = vadd.f32 %v647_v60, %v646_v56  ;;  %v1514_v56 = vld [vmem:[%s1955_s7] sm:$0xff]  }
  0xff   : > { %v1733_v63 = vadd.f32 %v609_v62, %v495_v61  ;;  %v611_v1 = vpop.f32.mrb[9].mxu0  ;;  %1450 = vmatprep.mubr.msk.bf16.mxu1 %vm779_vm1, %v1514_v56 }
 0x100   : > { %v1737_v5 = vadd.f32 %v611_v1, %v495_v61  ;;  %v613_v6 = vpop.f32.mrb[10].mxu0  ;;  %v705_v14 = vadd.f32 %v687_v3, %v686_v2 }
 0x101   : > { %v1739_v9 = vadd.f32 %v613_v6, %v500_v4  ;;  %v615_v10 = vpop.f32.mrb[11].mxu0  ;;  %v648_v11 = vmul.f32 %v1691_v21, %v1733_v63 }
 0x102   : > { %v1743_v12 = vadd.f32 %v615_v10, %v500_v4  ;;  %703 = vadd.xlane.f32.xlu1 %v702_v7  ;;  %666 = vadd.xlane.f32.xlu0 %v665_v8  ;;  %v649_v13 = vmul.f32 %v1693_v22, %v1737_v5 }
 0x103   : > { %v650_v15 = vmul.f32 %v1691_v21, %v1739_v9  ;;  %v688_v17 = vmul.f32 %v648_v11, %v1733_v63 }
 0x104   : > { %v668_v16 = vadd.f32 %v649_v13, %v648_v11  ;;  %v689_v18 = vmul.f32 %v649_v13, %v1737_v5  ;;  %v651_v19 = vmul.f32 %v1693_v22, %v1743_v12 }
 0x105   : > { %v690_v26 = vmul.f32 %v650_v15, %v1739_v9 }
 0x106   : > { %v619_v20 = vpop.f32.mrb[12].mxu0  ;;  %669 = vadd.xlane.f32.xlu1 %v668_v16  ;;  %706 = vadd.xlane.f32.xlu0 %v705_v14  ;;  %v691_v28 = vmul.f32 %v651_v19, %v1743_v12  ;;  %v708_v34 = vadd.f32 %v689_v18, %v688_v17  ;;  %v671_v35 = vadd.f32 %v651_v19, %v650_v15 }
 0x107   : > { %v621_v25 = vpop.f32.mrb[13].mxu0  ;;  %v1755_v30 = vadd.f32 %v619_v20, %v505_v23 }
 0x108   : > { %v1757_v31 = vadd.f32 %v621_v25, %v505_v23  ;;  %v623_v32 = vpop.f32.mrb[14].mxu0  ;;  %v711_v38 = vadd.f32 %v691_v28, %v690_v26 }
 0x109   : > { %v625_v36 = vpop.f32.mrb[15].mxu0  ;;  %v1759_v39 = vadd.f32 %v623_v32, %v510_v37  ;;  %v652_v41 = vmul.f32 %v1691_v21, %v1755_v30 }
 0x10a   : > { %709 = vadd.xlane.f32.xlu1 %v708_v34  ;;  %672 = vadd.xlane.f32.xlu0 %v671_v35  ;;  %v1761_v40 = vadd.f32 %v625_v36, %v510_v37  ;;  %v653_v43 = vmul.f32 %v1693_v22, %v1757_v31 }
 0x10b   : > { %v654_v45 = vmul.f32 %v1691_v21, %v1759_v39  ;;  %v692_v49 = vmul.f32 %v652_v41, %v1755_v30 }
 0x10c   : > { %v674_v44 = vadd.f32 %v653_v43, %v652_v41  ;;  %v655_v46 = vmul.f32 %v1693_v22, %v1761_v40  ;;  %v693_v51 = vmul.f32 %v653_v43, %v1757_v31 }
 0x10d   : > { %v694_v55 = vmul.f32 %v654_v45, %v1759_v39 }
 0x10e   : > { %712 = vadd.xlane.f32.xlu0 %v711_v38  ;;  %v677_v48 = vadd.f32 %v655_v46, %v654_v45  ;;  %v714_v52 = vadd.f32 %v693_v51, %v692_v49  ;;  %v695_v21 = vmul.f32 %v655_v46, %v1761_v40  ;;  %v1515_v46 = vld [vmem:[%s1955_s7 + $0x8] sm:$0xff]   ;;  %v1517_v49 = vld [vmem:[%s1955_s7 + $0x18] sm:$0xff]  }
 0x110   : > { %v717_v22 = vadd.f32 %v695_v21, %v694_v55 }
 0x112   : > { %675 = vadd.xlane.f32.xlu0 %v674_v44 }
 0x116   : > { %678 = vadd.xlane.f32.xlu0 %v677_v48  ;;  %v1516_v48 = vld [vmem:[%s1955_s7 + $0x10] sm:$0xff]  }
 0x11a   : > { %715 = vadd.xlane.f32.xlu0 %v714_v52 }
 0x11b   : > { %736 = vperm.xlu1 %1502, %v1403_v54  }
 0x11e   : > { %718 = vadd.xlane.f32.xlu0 %v717_v22 }
 0x183   : > { %v658_v57 = vpop.xlane.xlu0 %657 }
 0x185   : > { %v661_v58 = vpop.xlane.xlu1 %660 }
 0x187   : > { %v698_v59 = vpop.xlane.xlu0 %697 }
 0x188   : > { %v721_v7 = vsel %vm720_vm2, %v658_v57, %v698_v59 }
 0x18b   : > { %v664_v60 = vpop.xlane.xlu1 %663  ;;  %v701_v61 = vpop.xlane.xlu0 %700 }
 0x18c   : > { %v722_v8 = vsel %vm720_vm2, %v661_v58, %v701_v61 }
 0x18f   : > { %v704_v62 = vpop.xlane.xlu1 %703  ;;  %v667_v1 = vpop.xlane.xlu0 %666 }
 0x190   : > { %v723_v10 = vsel %vm720_vm2, %v664_v60, %v704_v62 }
 0x193   : > { %v670_v2 = vpop.xlane.xlu1 %669  ;;  %v707_v3 = vpop.xlane.xlu0 %706 }
 0x194   : > { %v724_v14 = vsel %vm720_vm2, %v667_v1, %v707_v3 }
 0x197   : > { %v710_v4 = vpop.xlane.xlu1 %709  ;;  %v673_v6 = vpop.xlane.xlu0 %672 }
 0x198   : > { %v725_v23 = vsel %vm720_vm2, %v670_v2, %v710_v4  ;;  %v930_v2 = vld [vmem:[%s431_s14 + $0x8] sm:$0xff]  ;;  %v932_v4 = vld [vmem:[%s431_s14 + $0x18] sm:$0xff] }
 0x19b   : > { %v737_v11 = vpop.permute.xlu1 %736  ;;  %v713_v13 = vpop.xlane.xlu0 %712 }
 0x19c   : > { %v739_v15 = vmul.f32 %v737_v11, %v721_v7  ;;  %v740_v16 = vmul.f32 %v737_v11, %v722_v8  ;;  %v741_v17 = vmul.f32 %v737_v11, %v723_v10  ;;  %v726_v18 = vsel %vm720_vm2, %v673_v6, %v713_v13  ;;  %v934_v7 = vld [vmem:[%s431_s14 + $0x28] sm:$0xff]  ;;  %v929_v8 = vld [vmem:[%s431_s14] sm:$0xff]  ;;  %v936_v10 = vld [vmem:[%s431_s14 + $0x38] sm:$0xff] }
 0x19d   : > { %v742_v19 = vmul.f32 %v737_v11, %v724_v14  ;;  %v744_v26 = vmul.f32 %v737_v11, %v726_v18  ;;  %v743_v32 = vmul.f32 %v737_v11, %v725_v23  ;;  %v933_v13 = vld [vmem:[%s431_s14 + $0x20] sm:$0xff]  ;;  %v935_v14 = vld [vmem:[%s431_s14 + $0x30] sm:$0xff]  ;;  %v1090_v18 = vld [vmem:[%s1863_s19 + $0x8] sm:$0xff] }
 0x19e   : > { %v747_v20 = vpack.c.bf16 %v740_v16, %v739_v15  ;;  %v1089_v15 = vld [vmem:[%s1863_s19] sm:$0xff]  ;;  %v1092_v16 = vld [vmem:[%s1863_s19 + $0x18] sm:$0xff] }
 0x19f   : > { %v676_v25 = vpop.xlane.xlu0 %675  ;;  %v748_v28 = vpack.c.bf16 %v742_v19, %v741_v17  ;;  %v749_v35 = vpack.c.bf16 %v744_v26, %v743_v32  ;;  %v1094_v17 = vld [vmem:[%s1863_s19 + $0x28] sm:$0xff]  ;;  %v1091_v19 = vld [vmem:[%s1863_s19 + $0x10] sm:$0xff]  ;;  %v1093_v23 = vld [vmem:[%s1863_s19 + $0x20] sm:$0xff] }
 0x1a0   : > { %1442 = vmatprep.subr.bf16.mxu1 %v747_v20 }
 0x1a1   : > { %1443 = vmatpush3.bf16.msra.mxu1 %v747_v20  ;;  %v1576_v20 = vmov 1  }
 0x1a2   : > { %1444 = vmatprep.subr.bf16.mxu1 %v748_v28 }
 0x1a3   : > { %v679_v34 = vpop.xlane.xlu0 %678 }
 0x1a5   : > { %1445 = vmatpush3.bf16.msra.mxu1 %v748_v28 }
 0x1a6   : > { %1446 = vmatprep.subr.bf16.mxu1 %v749_v35 }
 0x1a7   : > { %v716_v36 = vpop.xlane.xlu0 %715 }
 0x1a8   : > { %v727_v37 = vsel %vm720_vm2, %v676_v25, %v716_v36 }
 0x1a9   : > { %1447 = vmatpush3.bf16.msra.mxu1 %v749_v35  ;;  %v745_v43 = vmul.f32 %v737_v11, %v727_v37 }
 0x1ab   : > { %v719_v38 = vpop.xlane.xlu0 %718 }
 0x1ac   : > { %v728_v41 = vsel %vm720_vm2, %v679_v34, %v719_v38 }
 0x1ad   : > { %v746_v44 = vmul.f32 %v737_v11, %v728_v41  ;;  %v931_v11 = vld [vmem:[%s431_s14 + $0x10] sm:$0xff] }
 0x1af   : > { %v750_v45 = vpack.c.bf16 %v746_v44, %v745_v43 }
 0x1b1   : > { %1448 = vmatprep.subr.bf16.mxu1 %v750_v45 }
 0x1b2   : > { %1449 = vmatpush3.bf16.msra.mxu1 %v750_v45 }
 0x1b5   : > { %1451 = vmatmul.mubr.msk.bf16.vlgmr.msra.gmra.mrb[0].mxu1 %vm779_vm1, %v1515_v46 }
 0x1b6   : > { %1454 = vmatprep.mubr.msk.bf16.mxu1 %vm779_vm1, %v1516_v48 }
 0x1bd   : > { %1455 = vmatmul.mubr.msk.bf16.gmra.mrb[4].mxu1 %vm779_vm1, %v1517_v49 }
 0x288   : > { %v1803_v51 = vpop.f32.mrb[0].mxu1 }
 0x289   : > { %v859_v52 = vmul.f32 %v1803_v51, %v1803_v51  ;;  %v1807_v54 = vpop.f32.mrb[1].mxu1 }
 0x28a   : > { %v1809_v55 = vpop.f32.mrb[2].mxu1  ;;  %v857_v56 = vmul.f32 %v1807_v54, %v1807_v54 }
 0x28b   : > { %877 = vrot.lane.b32.xlu1 %v859_v52, %s1575_s27  ;;  %v1812_v21 = vpop.f32.mrb[3].mxu1  ;;  %v860_v58 = vmul.f32 %v1809_v55, %v1809_v55 }
 0x28c   : > { %v858_v22 = vmul.f32 %v1812_v21, %v1812_v21 }
 0x28e   : > { %875 = vrot.lane.b32.xlu0 %v858_v22, %s1575_s27 }
 0x28f   : > { %873 = vrot.lane.b32.xlu1 %v857_v56, %s1575_s27 }
 0x290   : > { %v1820_v57 = vpop.f32.mrb[4].mxu1 }
 0x291   : > { %v1824_v59 = vpop.f32.mrb[5].mxu1  ;;  %v863_v6 = vmul.f32 %v1820_v57, %v1820_v57 }
 0x292   : > { %v1826_v60 = vpop.f32.mrb[6].mxu1  ;;  %v861_v61 = vmul.f32 %v1824_v59, %v1824_v59 }
 0x293   : > { %v864_v62 = vmul.f32 %v1826_v60, %v1826_v60  ;;  %879 = vrot.lane.b32.xlu1 %v860_v58, %s1575_s27  ;;  %v1833_v1 = vpop.f32.mrb[7].mxu1 }
 0x294   : > { %v862_v3 = vmul.f32 %v1833_v1, %v1833_v1 }
 0x295   : > { %887 = vrot.lane.b32.xlu0 %v864_v62, %s1575_s27 }
 0x297   : > { %881 = vrot.lane.b32.xlu1 %v861_v61, %s1575_s27 }
 0x299   : > { %947 = vrot.lane.b32.xlu0 %v930_v2, %s1575_s27 }
 0x29b   : > { %883 = vrot.lane.b32.xlu1 %v862_v3, %s1575_s27 }
 0x29d   : > { %951 = vrot.lane.b32.xlu0 %v932_v4, %s1575_s27 }
 0x29f   : > { %885 = vrot.lane.b32.xlu1 %v863_v6, %s1575_s27 }
 0x2a1   : > { %955 = vrot.lane.b32.xlu0 %v934_v7, %s1575_s27 }
 0x2a3   : > { %945 = vrot.lane.b32.xlu1 %v929_v8, %s1575_s27 }
 0x2a5   : > { %959 = vrot.lane.b32.xlu0 %v936_v10, %s1575_s27 }
 0x2a7   : > { %949 = vrot.lane.b32.xlu1 %v931_v11, %s1575_s27 }
 0x2a9   : > { %984 = vperm.xlu0 %1501, %v1812_v21  }
 0x2ab   : > { %953 = vrot.lane.b32.xlu1 %v933_v13, %s1575_s27 }
 0x2ad   : > { %994 = vperm.xlu0 %1501, %v1809_v55  }
 0x2af   : > { %957 = vrot.lane.b32.xlu1 %v935_v14, %s1575_s27 }
 0x2b1   : > { %1004 = vperm.xlu0 %1501, %v1833_v1  }
 0x2b3   : > { %979 = vperm.xlu1 %1502, %v1807_v54  }
 0x2b5   : > { %1014 = vperm.xlu0 %1501, %v1826_v60  }
 0x2b7   : > { %989 = vperm.xlu1 %1502, %v1803_v51  }
 0x2b9   : > { %1099 = vperm.xlu0 %1501, %v1089_v15  }
 0x2bb   : > { %999 = vperm.xlu1 %1502, %v1824_v59  }
 0x2bd   : > { %1114 = vperm.xlu0 %1501, %v1092_v16  }
 0x2bf   : > { %1009 = vperm.xlu1 %1502, %v1820_v57  }
 0x2c1   : > { %1124 = vperm.xlu0 %1501, %v1094_v17  }
 0x2c3   : > { %1104 = vperm.xlu1 %1502, %v1090_v18  }
 0x2c5   : > { %1504 = vset.pattern.permute.xlu0 %v1576_v20 }
 0x2c7   : > { %1109 = vperm.xlu1 %1502, %v1091_v19  }
 0x2cb   : > { %1119 = vperm.xlu1 %1502, %v1093_v23  }
 0x2cf   : > { %1503 = vset.pattern.permute.xlu1 %v1576_v20 }
 0x2fd   : > { %v878_v25 = vpop.permute.xlu1 %877 }
 0x2fe   : > { %v899_v34 = vsub.f32 %v1803_v51, %v878_v25 }
 0x300   : > { %v876_v26 = vpop.permute.xlu0 %875  ;;  %v907_v38 = vmax.f32 %v899_v34, 0.0 }
 0x301   : > { %v898_v28 = vsub.f32 %v1812_v21, %v876_v26  ;;  %v874_v32 = vpop.permute.xlu1 %873 }
 0x302   : > { %v897_v41 = vsub.f32 %v1807_v54, %v874_v32  ;;  %v915_v46 = vadd.f32 1e-05, %v907_v38 }
 0x303   : > { %v906_v35 = vmax.f32 %v898_v28, 0.0 }
 0x304   : > { %v905_v48 = vmax.f32 %v897_v41, 0.0  ;;  %v1096_v41 = vld [vmem:[%s1863_s19 + $0x38] sm:$0xff] }
 0x305   : > { %v914_v36 = vadd.f32 1e-05, %v906_v35  ;;  %v880_v37 = vpop.permute.xlu1 %879 }
 0x306   : > { %v900_v43 = vsub.f32 %v1809_v55, %v880_v37  ;;  %v913_v22 = vadd.f32 1e-05, %v905_v48 }
 0x307   : > { %1518 = vrsqrt.f32 %v914_v36  ;;  %v888_v45 = vpop.permute.xlu0 %887 }
 0x308   : > { %v908_v49 = vmax.f32 %v900_v43, 0.0  ;;  %v904_v52 = vsub.f32 %v1826_v60, %v888_v45  ;;  %1520 = vrsqrt.f32 %v915_v46  ;;  %v1095_v43 = vld [vmem:[%s1863_s19 + $0x30] sm:$0xff] }
 0x309   : > { %v882_v44 = vpop.permute.xlu1 %881  ;;  %1522 = vrsqrt.f32 %v913_v22 }
 0x30a   : > { %v901_v51 = vsub.f32 %v1824_v59, %v882_v44  ;;  %v916_v58 = vadd.f32 1e-05, %v908_v49  ;;  %v912_v61 = vmax.f32 %v904_v52, 0.0 }
 0x30b   : > { %v948_v62 = vpop.permute.xlu0 %947 }
 0x30c   : > { %v909_v4 = vmax.f32 %v901_v51, 0.0  ;;  %1524 = vrsqrt.f32 %v916_v58  ;;  %v920_v60 = vadd.f32 1e-05, %v912_v61 }
 0x30d   : > { %v884_v21 = vpop.permute.xlu1 %883 }
 0x30e   : > { %v902_v54 = vsub.f32 %v1833_v1, %v884_v21  ;;  %v917_v11 = vadd.f32 1e-05, %v909_v4 }
 0x30f   : > { %v952_v59 = vpop.permute.xlu0 %951 }
 0x310   : > { %v910_v7 = vmax.f32 %v902_v54, 0.0 }
 0x311   : > { %v1519_v56 = vpop.eup %1518  ;;  %v886_v2 = vpop.permute.xlu1 %885 }
 0x312   : > { %v970_v55 = vmul.f32 %v1519_v56, %v948_v62  ;;  %v903_v3 = vsub.f32 %v1820_v57, %v886_v2  ;;  %v1521_v13 = vpop.eup %1520  ;;  %v918_v14 = vadd.f32 1e-05, %v910_v7 }
 0x313   : > { %v1523_v57 = vpop.eup %1522  ;;  %v956_v16 = vpop.permute.xlu0 %955 }
 0x314   : > { %v911_v6 = vmax.f32 %v903_v3, 0.0  ;;  %1040 = vperm.xlu0 %1504, %v970_v55  }
 0x315   : > { %v946_v8 = vpop.permute.xlu1 %945 }
 0x316   : > { %v919_v10 = vadd.f32 1e-05, %v911_v6  ;;  %v969_v18 = vmul.f32 %v1523_v57, %v946_v8  ;;  %v1525_v19 = vpop.eup %1524 }
 0x317   : > { %v972_v25 = vmul.f32 %v1525_v19, %v952_v59  ;;  %v960_v28 = vpop.permute.xlu0 %959 }
 0x318   : > { %1526 = vrsqrt.f32 %v919_v10 }
 0x319   : > { %1528 = vrsqrt.f32 %v920_v60  ;;  %v950_v1 = vpop.permute.xlu1 %949 }
 0x31a   : > { %v971_v15 = vmul.f32 %v1521_v13, %v950_v1  ;;  %1530 = vrsqrt.f32 %v917_v11 }
 0x31b   : > { %1532 = vrsqrt.f32 %v918_v14 }
 0x31c   : > { %1045 = vperm.xlu1 %1503, %v971_v15  }
 0x31d   : > { %v954_v17 = vpop.permute.xlu1 %953 }
 0x320   : > { %1035 = vperm.xlu1 %1503, %v969_v18  }
 0x321   : > { %v958_v20 = vpop.permute.xlu1 %957 }
 0x322   : > { %v1527_v23 = vpop.eup %1526 }
 0x323   : > { %v1529_v26 = vpop.eup %1528  ;;  %v975_v32 = vmul.f32 %v1527_v23, %v958_v20 }
 0x324   : > { %1050 = vperm.xlu1 %1503, %v972_v25   ;;  %v1531_v34 = vpop.eup %1530  ;;  %v976_v35 = vmul.f32 %v1529_v26, %v960_v28 }
 0x325   : > { %1065 = vperm.xlu0 %1504, %v975_v32   ;;  %v1533_v36 = vpop.eup %1532  ;;  %v973_v37 = vmul.f32 %v1531_v34, %v954_v17 }
 0x326   : > { %v974_v38 = vmul.f32 %v1533_v36, %v956_v16 }
 0x328   : > { %1070 = vperm.xlu1 %1503, %v976_v35   ;;  %v985_v44 = vpop.permute.xlu0 %984 }
 0x329   : > { %1055 = vperm.xlu0 %1504, %v973_v37   ;;  %v1020_v54 = vsub.f32 %v1703_v33, %v985_v44 }
 0x32c   : > { %1060 = vperm.xlu1 %1503, %v974_v38   ;;  %v995_v45 = vpop.permute.xlu0 %994 }
 0x32d   : > { %1506 = vset.pattern.permute.xlu0 %v1574_v0  ;;  %v1024_v18 = vsub.f32 %v1723_v53, %v995_v45 }
 0x32e   : > { %1134 = vperm.xlu0 %1506, %v1096_v41  }
 0x330   : > { %1505 = vset.pattern.permute.xlu1 %v1574_v0  ;;  %v1887_v48 = vpop.permute.xlu0 %1004  ;;  %v1019_v0 = vsub.f32 %v1699_v29, %v985_v44 }
 0x331   : > { %1129 = vperm.xlu1 %1505, %v1095_v43   ;;  %v1027_v38 = vsub.f32 %v1739_v9, %v1887_v48  ;;  %v1028_v41 = vsub.f32 %v1743_v12, %v1887_v48 }
 0x332   : > { %v980_v46 = vpop.permute.xlu1 %979 }
 0x333   : > { %v1017_v11 = vsub.f32 %v1695_v24, %v980_v46  ;;  %v1018_v13 = vsub.f32 %v1697_v27, %v980_v46 }
 0x334   : > { %v1889_v52 = vpop.permute.xlu0 %1014 }
 0x335   : > { %v1031_v43 = vsub.f32 %v1759_v39, %v1889_v52  ;;  %v1032_v44 = vsub.f32 %v1761_v40, %v1889_v52 }
 0x336   : > { %v990_v49 = vpop.permute.xlu1 %989 }
 0x337   : > { %v1021_v8 = vsub.f32 %v1713_v42, %v990_v49  ;;  %v1022_v29 = vsub.f32 %v1717_v47, %v990_v49  ;;  %v1023_v42 = vsub.f32 %v1719_v50, %v995_v45 }
 0x338   : > { %v1100_v22 = vpop.permute.xlu0 %1099 }
 0x33a   : > { %v1000_v21 = vpop.permute.xlu1 %999 }
 0x33b   : > { %v1025_v32 = vsub.f32 %v1733_v63, %v1000_v21  ;;  %v1026_v34 = vsub.f32 %v1737_v5, %v1000_v21 }
 0x33c   : > { %v1115_v56 = vpop.permute.xlu0 %1114 }
 0x33e   : > { %v1891_v51 = vpop.permute.xlu1 %1009 }
 0x33f   : > { %v1029_v9 = vsub.f32 %v1755_v30, %v1891_v51  ;;  %v1030_v12 = vsub.f32 %v1757_v31, %v1891_v51 }
 0x340   : > { %v1893_v61 = vpop.permute.xlu0 %1124 }
 0x342   : > { %v1105_v58 = vpop.permute.xlu1 %1104 }
 0x346   : > { %v1110_v62 = vpop.permute.xlu1 %1109 }
 0x34a   : > { %v1120_v60 = vpop.permute.xlu1 %1119 }
 0x393   : > { %v1041_v2 = vpop.permute.xlu0 %1040 }
 0x394   : > { %v1075_v55 = vmul.f32 %v1041_v2, %v1019_v0  ;;  %v1076_v3 = vmul.f32 %v1041_v2, %v1020_v54 }
 0x396   : > { %v1139_v4 = vadd.f32 %v1105_v58, %v1075_v55  ;;  %v1140_v6 = vadd.f32 %v1105_v58, %v1076_v3 }
 0x398   : > { %v1427_v7 = vpack.c.bf16 %v1140_v6, %v1139_v4 }
 0x39a   : > { %1202 = vst [vmem:[%s1901_s28 + $0x8] sm:$0xff] %v1427_v7 }
 0x39b   : > { %v1046_v33 = vpop.permute.xlu1 %1045 }
 0x39c   : > { %v1077_v10 = vmul.f32 %v1046_v33, %v1021_v8  ;;  %v1078_v59 = vmul.f32 %v1046_v33, %v1022_v29 }
 0x39e   : > { %v1141_v14 = vadd.f32 %v1110_v62, %v1077_v10  ;;  %v1142_v1 = vadd.f32 %v1110_v62, %v1078_v59 }
 0x39f   : > { %v1036_v15 = vpop.permute.xlu1 %1035 }
 0x3a0   : > { %v1428_v57 = vpack.c.bf16 %v1142_v1, %v1141_v14  ;;  %v1073_v16 = vmul.f32 %v1036_v15, %v1017_v11  ;;  %v1074_v17 = vmul.f32 %v1036_v15, %v1018_v13 }
 0x3a2   : > { %1203 = vst [vmem:[%s1901_s28 + $0x10] sm:$0xff] %v1428_v57  ;;  %v1137_v47 = vadd.f32 %v1100_v22, %v1073_v16  ;;  %v1138_v19 = vadd.f32 %v1100_v22, %v1074_v17 }
 0x3a3   : > { %v1051_v20 = vpop.permute.xlu1 %1050 }
 0x3a4   : > { %v1426_v23 = vpack.c.bf16 %v1138_v19, %v1137_v47  ;;  %v1079_v25 = vmul.f32 %v1051_v20, %v1023_v42  ;;  %v1080_v24 = vmul.f32 %v1051_v20, %v1024_v18  ;;  %v1066_v27 = vpop.permute.xlu0 %1065 }
 0x3a5   : > { %v1085_v62 = vmul.f32 %v1066_v27, %v1029_v9  ;;  %v1086_v0 = vmul.f32 %v1066_v27, %v1030_v12 }
 0x3a6   : > { %1201 = vst [vmem:[%s1901_s28] sm:$0xff] %v1426_v23  ;;  %v1143_v26 = vadd.f32 %v1115_v56, %v1079_v25  ;;  %v1144_v28 = vadd.f32 %v1115_v56, %v1080_v24 }
 0x3a7   : > { %v1071_v35 = vpop.permute.xlu1 %1070 }
 0x3a8   : > { %v1429_v50 = vpack.c.bf16 %v1144_v28, %v1143_v26  ;;  %v1056_v36 = vpop.permute.xlu0 %1055  ;;  %v1087_v46 = vmul.f32 %v1071_v35, %v1031_v43  ;;  %v1088_v49 = vmul.f32 %v1071_v35, %v1032_v44 }
 0x3a9   : > { %v1081_v53 = vmul.f32 %v1056_v36, %v1025_v32  ;;  %v1082_v37 = vmul.f32 %v1056_v36, %v1026_v34 }
 0x3aa   : > { %1204 = vst [vmem:[%s1901_s28 + $0x18] sm:$0xff] %v1429_v50 }
 0x3ab   : > { %v1145_v63 = vadd.f32 %v1120_v60, %v1081_v53  ;;  %v1146_v5 = vadd.f32 %v1120_v60, %v1082_v37  ;;  %v1061_v45 = vpop.permute.xlu1 %1060 }
 0x3ac   : > { %v1083_v21 = vmul.f32 %v1061_v45, %v1027_v38  ;;  %v1084_v22 = vmul.f32 %v1061_v45, %v1028_v41 }
 0x3ad   : > { %v1430_v39 = vpack.c.bf16 %v1146_v5, %v1145_v63  ;;  %v1135_v48 = vpop.permute.xlu0 %1134 }
 0x3ae   : > { %v1147_v40 = vadd.f32 %v1893_v61, %v1083_v21  ;;  %v1148_v52 = vadd.f32 %v1893_v61, %v1084_v22  ;;  %v1151_v56 = vadd.f32 %v1135_v48, %v1087_v46  ;;  %v1152_v58 = vadd.f32 %v1135_v48, %v1088_v49 }
 0x3af   : > { %1205 = vst [vmem:[%s1901_s28 + $0x20] sm:$0xff] %v1430_v39 }
 0x3b0   : > { %v1431_v54 = vpack.c.bf16 %v1148_v52, %v1147_v40  ;;  %v1433_v2 = vpack.c.bf16 %v1152_v58, %v1151_v56  ;;  %v1130_v30 = vpop.permute.xlu1 %1129 }
 0x3b1   : > { %v1149_v55 = vadd.f32 %v1130_v30, %v1085_v62  ;;  %v1150_v3 = vadd.f32 %v1130_v30, %v1086_v0 }
 0x3b2   : > { %1206 = vst [vmem:[%s1901_s28 + $0x28] sm:$0xff] %v1431_v54  ;;  %1208 = vst [vmem:[%s1901_s28 + $0x38] sm:$0xff] %v1433_v2 }
 0x3b3   : > { %v1432_v31 = vpack.c.bf16 %v1150_v3, %v1149_v55 }
 0x3b5   : > { %1207 = vst [vmem:[%s1901_s28 + $0x30] sm:$0xff] %v1432_v31 }
 0x3b6 PF: > { %s18_s9 = sadd.s32 1, %s1572_s9   ;;  %s1957_s27 = smov %s1564_s29 }
 0x3b7   : > { %p15_p7 = scmp.ge.s32.totalorder %s18_s9, 6   ;;  %s1958_s28 = smov %s1568_s30 }
 0x3b8   : > { %s1959_s29 = smov %s1962_s10  ;;  %s1960_s30 = smov %s1966_s11 }
 0x3b9   :  { %17 = sbr.rel (!%p15_p7) target bundleno = 3 (0x3), region = 100 }

// kernel: forward.3
= control target key start
LH: loop header
LB: loop body
LE: loop exit
PB: predicated region body
PF: predicated region fallthrough
CT: control target
= control target key end

     0   :  { %vm75_vm0 = vcmask 523264   ;;  %vm431_vm1 = vcmask 130048   ;;  %vm436_vm2 = vcmask 162816   ;;  %s716_s2 = inlined_call_operand.vmem [shape: bf16[64,80], index: 2, kind: input, shape index: {}]   ;;  %s717_s0 = inlined_call_operand.vmem [shape: f32[32,64], index: 0, kind: input, shape index: {}]   ;;  %s718_s4 = inlined_call_operand.vmem [shape: bf16[64,64], index: 4, kind: input, shape index: {}]   ;;  %s719_s6 = inlined_call_operand.vmem [shape: bf16[64,4], index: 6, kind: input, shape index: {}]   ;;  %s720_s3 = inlined_call_operand.vmem [shape: f32[1,80], index: 3, kind: input, shape index: {}]   ;;  %s721_s5 = inlined_call_operand.vmem [shape: f32[1,64], index: 5, kind: input, shape index: {}]   ;;  %s722_s1 = inlined_call_operand.vmem [shape: f32[32,4], index: 1, kind: input, shape index: {}]   ;;  %s723_s7 = inlined_call_operand.vmem [shape: f32[1,4], index: 7, kind: input, shape index: {}]   ;;  %s724_s8 = inlined_call_operand.vmem [shape: f32[32,128], index: 8, kind: output, shape index: {}]  }
   0x1   :  { %v530_v0 = vld [vmem:[%s716_s2] sm:$0xff]   ;;  %v531_v1 = vld [vmem:[%s716_s2 + $0x8] sm:$0xff]   ;;  %v532_v2 = vld [vmem:[%s716_s2 + $0x10] sm:$0xff]  }
   0x2   :  { %492 = vmatprep.subr.bf16.mxu0 %v530_v0  ;;  %v30_v3 = vld [vmem:[%s717_s0] sm:$0xff]  ;;  %v31_v4 = vld [vmem:[%s717_s0 + $0x8] sm:$0xff]  ;;  %v533_v8 = vld [vmem:[%s716_s2 + $0x18] sm:$0xff]  }
   0x3   :  { %493 = vmatpush3.bf16.msra.mxu0 %v530_v0  ;;  %v34_v5 = vpack.c.bf16 %v31_v4, %v30_v3  ;;  %v534_v6 = vld [vmem:[%s718_s4] sm:$0xff]   ;;  %v535_v7 = vld [vmem:[%s718_s4 + $0x8] sm:$0xff]   ;;  %v32_v9 = vld [vmem:[%s717_s0 + $0x10] sm:$0xff] }
   0x4   :  { %494 = vmatprep.subr.bf16.mxu0 %v531_v1  ;;  %504 = vmatprep.subr.bf16.mxu1 %v534_v6  ;;  %v33_v10 = vld [vmem:[%s717_s0 + $0x18] sm:$0xff]  ;;  %v536_v12 = vld [vmem:[%s718_s4 + $0x10] sm:$0xff]   ;;  %v538_v14 = vld [vmem:[%s719_s6] sm:$0xff]  }
   0x5   :  { %500 = vmatprep.mubr.msk.bf16.mxu0 %vm75_vm0, %v34_v5  ;;  %505 = vmatpush3.bf16.msra.mxu1 %v534_v6  ;;  %v35_v11 = vpack.c.bf16 %v33_v10, %v32_v9  ;;  %v537_v13 = vld [vmem:[%s718_s4 + $0x18] sm:$0xff]   ;;  %v539_v15 = vld [vmem:[%s719_s6 + $0x8] sm:$0xff]   ;;  %v449_v16 = vld [vmem:[%s720_s3] ss:$0 sm:$0xff]  ;;  %s574_s4 = smov 64  }
   0x6   :  { %506 = vmatprep.subr.bf16.mxu1 %v535_v7  ;;  %v540_v31 = vld [vmem:[%s719_s6 + $0x10] sm:$0xff]   ;;  %v541_v32 = vld [vmem:[%s719_s6 + $0x18] sm:$0xff]   ;;  %v456_v33 = vld [vmem:[%s721_s5] ss:$0 sm:$0xff] }
   0x7   :  { %495 = vmatpush3.bf16.msra.mxu0 %v531_v1  ;;  %v333_v48 = vld [vmem:[%s722_s1 + $0x10] sm:$0xff]  ;;  %v331_v49 = vld [vmem:[%s722_s1] sm:$0xff]  ;;  %v334_v50 = vld [vmem:[%s722_s1 + $0x18] sm:$0xff] }
   0x8   :  { %496 = vmatprep.subr.bf16.mxu0 %v532_v2  ;;  %v337_v51 = vmax.f32 %v333_v48, 0.0  ;;  %v332_v52 = vld [vmem:[%s722_s1 + $0x8] sm:$0xff]  ;;  %v335_v53 = vmax.f32 %v331_v49, 0.0  ;;  %v338_v54 = vmax.f32 %v334_v50, 0.0 }
   0x9   :  { %507 = vmatpush3.bf16.msra.mxu1 %v535_v7  ;;  %v336_v55 = vmax.f32 %v332_v52, 0.0 }
   0xa   :  { %508 = vmatprep.subr.bf16.mxu1 %v536_v12  ;;  %v341_v56 = vmin.f32 %v337_v51, 1.0  ;;  %v339_v57 = vmin.f32 %v335_v53, 1.0  ;;  %v342_v58 = vmin.f32 %v338_v54, 1.0 }
   0xb   :  { %497 = vmatpush3.bf16.msra.mxu0 %v532_v2  ;;  %v340_v59 = vmin.f32 %v336_v55, 1.0 }
   0xc   :  { %498 = vmatprep.subr.bf16.mxu0 %v533_v8  ;;  %v349_v60 = vsub.f32 1.0, %v341_v56  ;;  %v347_v61 = vsub.f32 1.0, %v339_v57  ;;  %v350_v62 = vsub.f32 1.0, %v342_v58  ;;  %v345_v4 = vmax.f32 %v341_v56, 1e-05 }
   0xd   :  { %509 = vmatpush3.bf16.msra.mxu1 %v536_v12  ;;  %v348_v63 = vsub.f32 1.0, %v340_v59  ;;  %v343_v6 = vmax.f32 %v339_v57, 1e-05  ;;  %v344_v10 = vmax.f32 %v340_v59, 1e-05 }
   0xe   :  { %510 = vmatprep.subr.bf16.mxu1 %v537_v13  ;;  %v353_v0 = vmax.f32 %v349_v60, 1e-05  ;;  %v351_v1 = vmax.f32 %v347_v61, 1e-05  ;;  %v354_v2 = vmax.f32 %v350_v62, 1e-05 }
   0xf   :  { %499 = vmatpush3.bf16.msra.mxu0 %v533_v8  ;;  %v352_v3 = vmax.f32 %v348_v63, 1e-05  ;;  %v346_v8 = vmax.f32 %v342_v58, 1e-05 }
  0x10   :  { %516 = vmatprep.subr.bf16.mxu0 %v538_v14  ;;  %542 = vrcp.f32 %v353_v0 }
  0x11   :  { %511 = vmatpush3.bf16.msra.mxu1 %v537_v13  ;;  %544 = vrcp.f32 %v351_v1 }
  0x12   :  { %501 = vmatmul.mubr.msk.bf16.vlgmr.msra.gmra.mrb[0].mxu0 %vm75_vm0, %v35_v11  ;;  %546 = vrcp.f32 %v354_v2 }
  0x13   :  { %517 = vmatpush3.bf16.msra.mxu0 %v538_v14  ;;  %548 = vrcp.f32 %v352_v3 }
  0x14   :  { %518 = vmatprep.subr.bf16.mxu0 %v539_v15 }
  0x17   :  { %519 = vmatpush3.bf16.msra.mxu0 %v539_v15 }
  0x18   :  { %520 = vmatprep.subr.bf16.mxu0 %v540_v31 }
  0x1a   :  { %v543_v5 = vpop.eup %542 }
  0x1b   :  { %521 = vmatpush3.bf16.msra.mxu0 %v540_v31  ;;  %v545_v7 = vpop.eup %544  ;;  %v360_v12 = vmul.f32 %v543_v5, %v345_v4 }
  0x1c   :  { %522 = vmatprep.subr.bf16.mxu0 %v541_v32  ;;  %v547_v9 = vpop.eup %546  ;;  %v356_v13 = vmul.f32 %v545_v7, %v343_v6 }
  0x1d   :  { %v549_v11 = vpop.eup %548  ;;  %v362_v14 = vmul.f32 %v547_v9, %v346_v8  ;;  %550 = vlog2.f32 %v360_v12 }
  0x1e   :  { %v358_v15 = vmul.f32 %v549_v11, %v344_v10  ;;  %552 = vlog2.f32 %v356_v13 }
  0x1f   :  { %523 = vmatpush3.bf16.msra.mxu0 %v541_v32  ;;  %554 = vlog2.f32 %v362_v14 }
  0x20   :  { %556 = vlog2.f32 %v358_v15 }
  0xe5   :  { %v502_v17 = vpop.f32.mrb[0].mxu0 }
  0xe6   :  { %v125_v18 = vadd.f32 %v502_v17, %v449_v16  ;;  %v116_v19 = vpop.f32.mrb[1].mxu0 }
  0xe7   :  { %v117_v20 = vadd.f32 %v449_v16, %v116_v19  ;;  %v503_v21 = vpop.f32.mrb[2].mxu0  ;;  %v463_v19 = vld [vmem:[%s723_s7] ss:$0 sm:$0xff]  ;;  %s575_s7 = smov 16  }
  0xe8   :  { %v128_v22 = vadd.f32 %v503_v21, %v449_v16  ;;  %407 = vrot.lane.b32.xlu1 %v125_v18, %s574_s4  ;;  %v119_v23 = vpop.f32.mrb[3].mxu0  ;;  %v133_v25 = vmax.f32 %v125_v18, 0.0 }
  0xe9   :  { %v120_v24 = vadd.f32 %v449_v16, %v119_v23  ;;  %403 = vrot.lane.b32.xlu0 %v117_v20, %s574_s4  ;;  %v131_v27 = vmax.f32 %v117_v20, 0.0  ;;  %v551_v16 = vpop.eup %550 }
  0xea   :  { %v134_v26 = vmax.f32 %v128_v22, 0.0  ;;  %v553_v17 = vpop.eup %552  ;;  %v368_v21 = vmul.f32 0.6931472, %v551_v16 }
  0xeb   :  { %v132_v28 = vmax.f32 %v120_v24, 0.0  ;;  %v555_v18 = vpop.eup %554  ;;  %v364_v23 = vmul.f32 0.6931472, %v553_v17 }
  0xec   :  { %v136_v29 = vpack.c.bf16 %v134_v26, %v133_v25  ;;  %409 = vrot.lane.b32.xlu1 %v128_v22, %s574_s4  ;;  %v557_v20 = vpop.eup %556  ;;  %v370_v26 = vmul.f32 0.6931472, %v555_v18 }
  0xed   :  { %405 = vrot.lane.b32.xlu0 %v120_v24, %s574_s4  ;;  %v135_v30 = vpack.c.bf16 %v132_v28, %v131_v27 }
  0xef   :  { %512 = vmatprep.mubr.msk.bf16.mxu1 %vm75_vm0, %v135_v30 }
  0xf0   :  { %513 = vmatmul.mubr.msk.bf16.vlgmr.msra.gmra.mrb[0].mxu1 %vm75_vm0, %v136_v29  ;;  %v366_v29 = vmul.f32 0.6931472, %v557_v20 }
 0x15a   :  { %v408_v54 = vpop.permute.xlu1 %407 }
 0x15b   :  { %v404_v53 = vpop.permute.xlu0 %403 }
 0x15e   :  { %v410_v56 = vpop.permute.xlu1 %409 }
 0x15f   :  { %v406_v55 = vpop.permute.xlu0 %405 }
 0x1c3   :  { %v514_v34 = vpop.f32.mrb[0].mxu1 }
 0x1c4   :  { %v225_v35 = vadd.f32 %v514_v34, %v456_v33  ;;  %v216_v36 = vpop.f32.mrb[1].mxu1 }
 0x1c5   :  { %v217_v37 = vadd.f32 %v456_v33, %v216_v36  ;;  %v515_v38 = vpop.f32.mrb[2].mxu1 }
 0x1c6   :  { %v228_v39 = vadd.f32 %v515_v38, %v456_v33  ;;  %v219_v40 = vpop.f32.mrb[3].mxu1  ;;  %v233_v42 = vmax.f32 %v225_v35, 0.0 }
 0x1c7   :  { %v220_v41 = vadd.f32 %v456_v33, %v219_v40  ;;  %v231_v44 = vmax.f32 %v217_v37, 0.0 }
 0x1c8   :  { %v234_v43 = vmax.f32 %v228_v39, 0.0 }
 0x1c9   :  { %v232_v45 = vmax.f32 %v220_v41, 0.0 }
 0x1ca   :  { %v236_v46 = vpack.c.bf16 %v234_v43, %v233_v42 }
 0x1cb   :  { %v235_v47 = vpack.c.bf16 %v232_v45, %v231_v44 }
 0x1cd   :  { %524 = vmatprep.mubr.msk.bf16.mxu0 %vm75_vm0, %v235_v47 }
 0x1ce   :  { %525 = vmatmul.mubr.msk.bf16.vlgmr.msra.gmra.mrb[4].mxu0 %vm75_vm0, %v236_v46 }
 0x2a1   :  { %v526_v22 = vpop.f32.mrb[4].mxu0 }
 0x2a2   :  { %v325_v24 = vadd.f32 %v526_v22, %v463_v19  ;;  %v316_v25 = vpop.f32.mrb[5].mxu0 }
 0x2a3   :  { %v317_v27 = vadd.f32 %v463_v19, %v316_v25  ;;  %v527_v28 = vpop.f32.mrb[6].mxu0 }
 0x2a4   :  { %v373_v30 = vadd.f32 %v368_v21, %v325_v24  ;;  %v328_v31 = vadd.f32 %v527_v28, %v463_v19  ;;  %v319_v32 = vpop.f32.mrb[7].mxu0 }
 0x2a5   :  { %v371_v33 = vadd.f32 %v364_v23, %v317_v27  ;;  %v320_v34 = vadd.f32 %v463_v19, %v319_v32 }
 0x2a6   :  { %v472_v35 = vmul.f32 -1.442695, %v373_v30  ;;  %v374_v36 = vadd.f32 %v370_v26, %v328_v31 }
 0x2a7   :  { %v470_v37 = vmul.f32 -1.442695, %v371_v33  ;;  %v372_v38 = vadd.f32 %v366_v29, %v320_v34 }
 0x2a8   :  { %558 = vpow2.f32 %v472_v35  ;;  %v473_v39 = vmul.f32 -1.442695, %v374_v36 }
 0x2a9   :  { %560 = vpow2.f32 %v470_v37  ;;  %v471_v40 = vmul.f32 -1.442695, %v372_v38 }
 0x2aa   :  { %562 = vpow2.f32 %v473_v39 }
 0x2ab   :  { %564 = vpow2.f32 %v471_v40 }
 0x2b2   :  { %v559_v41 = vpop.eup %558 }
 0x2b3   :  { %v561_v42 = vpop.eup %560  ;;  %v389_v46 = vadd.f32 1.0, %v559_v41 }
 0x2b4   :  { %v563_v43 = vpop.eup %562  ;;  %v387_v44 = vadd.f32 1.0, %v561_v42 }
 0x2b5   :  { %v565_v45 = vpop.eup %564  ;;  %v390_v48 = vadd.f32 1.0, %v563_v43 }
 0x2b6   :  { %566 = vrcp.f32 %v387_v44  ;;  %v388_v47 = vadd.f32 1.0, %v565_v45 }
 0x2b8   :  { %568 = vrcp.f32 %v388_v47 }
 0x2b9   :  { %570 = vrcp.f32 %v389_v46 }
 0x2ba   :  { %572 = vrcp.f32 %v390_v48 }
 0x2c0   :  { %v567_v49 = vpop.eup %566 }
 0x2c1   :  { %419 = vrot.lane.b32.xlu0 %v567_v49, %s575_s7 }
 0x2c2   :  { %v569_v50 = vpop.eup %568 }
 0x2c3   :  { %421 = vrot.lane.b32.xlu1 %v569_v50, %s575_s7  ;;  %v571_v51 = vpop.eup %570 }
 0x2c4   :  { %v573_v52 = vpop.eup %572 }
 0x2c5   :  { %423 = vrot.lane.b32.xlu0 %v571_v51, %s575_s7 }
 0x2c7   :  { %425 = vrot.lane.b32.xlu1 %v573_v52, %s575_s7 }
 0x333   :  { %v420_v57 = vpop.permute.xlu0 %419 }
 0x334   :  { %v432_v58 = vsel %vm431_vm1, %v404_v53, %v420_v57 }
 0x335   :  { %v437_v59 = vsel %vm436_vm2, %v432_v58, 0.0  ;;  %v422_v60 = vpop.permute.xlu1 %421 }
 0x336   :  { %441 = vst [vmem:[%s724_s8] sm:$0xff] %v437_v59  ;;  %v433_v61 = vsel %vm431_vm1, %v406_v55, %v422_v60 }
 0x337   :  { %v438_v62 = vsel %vm436_vm2, %v433_v61, 0.0  ;;  %v424_v63 = vpop.permute.xlu0 %423 }
 0x338   :  { %442 = vst [vmem:[%s724_s8 + $0x8] sm:$0xff] %v438_v62  ;;  %v434_v0 = vsel %vm431_vm1, %v408_v54, %v424_v63 }
 0x339   :  { %v439_v1 = vsel %vm436_vm2, %v434_v0, 0.0  ;;  %v426_v2 = vpop.permute.xlu1 %425 }
 0x33a   :  { %443 = vst [vmem:[%s724_s8 + $0x10] sm:$0xff] %v439_v1  ;;  %v435_v3 = vsel %vm431_vm1, %v410_v56, %v426_v2 }
 0x33b   :  { %v440_v4 = vsel %vm436_vm2, %v435_v3, 0.0 }
 0x33c   :  { %444 = vst [vmem:[%s724_s8 + $0x18] sm:$0xff] %v440_v4 }

</bundles_post_ra>
